<compile_context>
chip_gen: v6e
topology: v6e:2x2x1
jax: 0.10.0
libtpu: 0.0.40
codegen_flags: <defaults>
</compile_context>

<pallas_src>
import functools

import jax
import jax.numpy as jnp
from jax.experimental import pallas as pl
from jax.experimental.pallas import tpu as pltpu


# Tile caps (lanes / pixels per grid step).  Per-step VMEM with double buffering:
#   vertex: 2 * (3M + 3 + 3) * tv * 4 B   (~0.3 MiB at M=8, tv=2048)
#   loss:   2 * 2 * N * tp * 4 B          (~0.5 MiB at N=8, tp=8192)
# comfortably below every generation's scoped-VMEM budget.
VERTEX_LANE_TILE = 512
LOSS_PIXEL_TILE = 8192
VMEM_LIMIT_BYTES = 32 * 1024 * 1024


def _pick_tile(total, cap):
    """Largest multiple of 128 that divides `total` and is <= cap."""
    assert total % 128 == 0, total
    t = min(total, cap)
    t -= t % 128
    while total % t:
        t -= 128
    return t


# --------------------------------------------------------------------------------------
# Kernel 1: mode blend + offset_verts + camera transform (world -> view -> scaled NDC)
# --------------------------------------------------------------------------------------
def vertex_kernel(rt_ref, t_ref, f_ref, cvec_ref, modes_ref, verts_ref, out_ref):
    # rt_ref:    SMEM (9,)       R^T flattened row-major (applied to column vectors)
    # t_ref:     SMEM (3,)       T = -R^T @ position
    # f_ref:     SMEM (1,)       focal f = 1 / camera_focal
    # cvec_ref:  VMEM (3M, 1)    mode coefficients, repeated once per coordinate
    # modes_ref: VMEM (3M, tv)   coordinate-major mode tile; row c*M + m = modes[m, :, c]
    # verts_ref: VMEM (3, tv)    coordinate-major vertex tile
    # out_ref:   VMEM (3, tv)    scaled-NDC vertices
    M = modes_ref.shape[0] // 3

    # offsets = (mode_coeffs[:, None, None] * modes).sum(0):
    # one lane-broadcast multiply at full sublane utilization, then a cheap XLU
    # sublane reduction per coordinate (no per-m SMEM-scalar broadcasts).
    weighted = modes_ref[...] * cvec_ref[...]                  # (3M, tv)
    verts = verts_ref[...]                                     # (3, tv)
    vw = []
    for c in range(3):
        blend_c = jnp.sum(weighted[c * M:(c + 1) * M, :], axis=0, keepdims=True)
        vw.append(verts[c:c + 1, :] + blend_c)                 # (1, tv) world coords

    # world -> view:  X_view = X_world @ R + T (row vectors)  ==  R^T @ x + T (columns)
    x = rt_ref[0] * vw[0] + rt_ref[1] * vw[1] + rt_ref[2] * vw[2] + t_ref[0]
    y = rt_ref[3] * vw[0] + rt_ref[4] * vw[1] + rt_ref[5] * vw[2] + t_ref[1]
    z = rt_ref[6] * vw[0] + rt_ref[7] * vw[1] + rt_ref[8] * vw[2] + t_ref[2]

    # projection with K = diag(f, f, 1, 0), K[3,2] = -1, K[2,3] = 1 (row-vector conv.):
    #   [x y z 1] @ K = (f*x, f*y, z-1, z)  -> divide by w = z -> NDC,
    # then ZScaledMeshRasterizer multiplies the NDC z by 100.
    f = f_ref[0]
    inv_z = 1.0 / z  # TODO(synk): unguarded like the reference; clamp if z can hit ~0.
    out_ref[...] = jnp.concatenate(
        [f * x * inv_z, f * y * inv_z, 100.0 * (z - 1.0) * inv_z], axis=0)


# --------------------------------------------------------------------------------------
# Kernel 2: weighted per-image MSE loss (weights computed in-kernel from image_ref)
# --------------------------------------------------------------------------------------
def loss_kernel(ref_ref, img_ref, out_ref, sse_ref, cnt_ref, *, npix):
    # ref_ref: VMEM (N, tp)   silhouette target pixel tile (lane-dense H*W layout)
    # img_ref: VMEM (N, tp)   rendered alpha pixel tile
    # out_ref: SMEM (1, 1)    scalar loss
    # sse_ref: VMEM (N, 1)    running per-image squared-error sum
    # cnt_ref: VMEM (N, 1)    running per-image count of (image_ref > 0.5) pixels
    step = pl.program_id(0)

    @pl.when(step == 0)
    def _init():
        sse_ref[...] = jnp.zeros_like(sse_ref)
        cnt_ref[...] = jnp.zeros_like(cnt_ref)

    r = ref_ref[...]
    d = r - img_ref[...]
    sse_ref[...] += jnp.sum(d * d, axis=1, keepdims=True)
    cnt_ref[...] += jnp.sum((r > 0.5).astype(jnp.float32), axis=1, keepdims=True)

    @pl.when(step == pl.num_programs(0) - 1)
    def _finalize():
        w = (cnt_ref[...] > 0.0).astype(jnp.float32)           # (N, 1) weights
        num = jnp.sum(w * sse_ref[...])
        den = jnp.sum(w)                                       # NaN if 0, like the ref
        out_ref[0, 0] = num / (npix * den)


# --------------------------------------------------------------------------------------
# Glue: parameter -> rotation matrix math (tiny scalar math, plain JAX)
# --------------------------------------------------------------------------------------
def pan_tilt_roll_to_orientation(pan, tilt, roll):
    cp, sp = jnp.cos(pan), jnp.sin(pan)
    ct, st = jnp.cos(tilt), jnp.sin(tilt)
    cr, sr = jnp.cos(roll), jnp.sin(roll)
    Rpan = jnp.array([[cp, -sp, 0.0], [sp, cp, 0.0], [0.0, 0.0, 1.0]], jnp.float32)
    Rtilt = jnp.array([[1.0, 0.0, 0.0], [0.0, ct, -st], [0.0, st, ct]], jnp.float32)
    Rroll = jnp.array([[cr, -sr, 0.0], [sr, cr, 0.0], [0.0, 0.0, 1.0]], jnp.float32)
    return Rpan @ (Rtilt @ Rroll)


def pan_tilt_to_orientation(pan, tilt):
    cp, sp = jnp.cos(pan), jnp.sin(pan)
    ct, st = jnp.cos(tilt), jnp.sin(tilt)
    Rpan = jnp.array([[cp, -sp, 0.0], [sp, cp, 0.0], [0.0, 0.0, 1.0]], jnp.float32)
    Rtilt = jnp.array([[1.0, 0.0, 0.0], [0.0, ct, -st], [0.0, st, ct]], jnp.float32)
    return Rpan @ Rtilt


# --------------------------------------------------------------------------------------
# One-time layout preparation of the static mesh buffers (hoisted out of the forward)
# --------------------------------------------------------------------------------------
def prepare_mesh_data(modes, verts):
    """modes (M, V, 3) -> (3M, V) coordinate-major (row c*M + m = modes[m, :, c]);
       verts (V, 3)    -> (3, V).  Done once; these are static model buffers."""
    M, V, _ = modes.shape
    modes_cm = jnp.transpose(modes, (2, 0, 1)).reshape(3 * M, V).astype(jnp.float32)
    verts_cm = jnp.transpose(verts, (1, 0)).astype(jnp.float32)
    return modes_cm, verts_cm


# --------------------------------------------------------------------------------------
# Wrapper: ModelPanTiltRollModes.forward
# --------------------------------------------------------------------------------------
@functools.partial(jax.jit, static_argnames=("do_roll",))
def model_forward(params, modes_cm, verts_cm, image_ref, rendered_alpha, *, do_roll=False):
    """params: dict(pan, tilt, roll, position(3,), focal(1,), mode_coeffs(M,))
       modes_cm: (3M, V) / verts_cm: (3, V) from prepare_mesh_data
       image_ref / rendered_alpha: (N, H, W)."""
    m3, V = modes_cm.shape
    M = m3 // 3
    N, H, W = image_ref.shape
    assert V % 128 == 0 and (H * W) % 128 == 0

    # ----- camera math (render_args): tiny scalar math, plain JAX -----
    if do_roll:
        R = pan_tilt_roll_to_orientation(params["pan"], params["tilt"], params["roll"])
    else:
        R = pan_tilt_to_orientation(params["pan"], params["tilt"])
    Rt = R.T                                  # applied to column vectors
    T = -(Rt @ params["position"])            # (3,)
    f = 1.0 / params["focal"]                 # (1,)

    # coefficient column for the blend: row c*M + m -> coeffs[m]
    coeffs = params["mode_coeffs"].astype(jnp.float32)
    cvec = jnp.tile(coeffs, 3).reshape(3 * M, 1)

    smem = pl.BlockSpec(memory_space=pltpu.MemorySpace.SMEM)
    vmem_whole = pl.BlockSpec(memory_space=pltpu.MemorySpace.VMEM)

    # NOTE: on v6e/v7x the modes could be stored bf16 (f32 accumulate) to halve HBM
    # traffic; kept f32 here so the tight NDC tolerance holds on all generations.
    tv = _pick_tile(V, VERTEX_LANE_TILE)
    verts_ndc = pl.pallas_call(
        vertex_kernel,
        out_shape=jax.ShapeDtypeStruct((3, V), jnp.float32),
        grid=(V // tv,),
        in_specs=[smem, smem, smem,
                  vmem_whole,
                  pl.BlockSpec((3 * M, tv), lambda i: (0, i)),
                  pl.BlockSpec((3, tv), lambda i: (0, i))],
        out_specs=pl.BlockSpec((3, tv), lambda i: (0, i)),
        compiler_params=pltpu.CompilerParams(
            dimension_semantics=("parallel",),
            vmem_limit_bytes=VMEM_LIMIT_BYTES),
    )(
        Rt.reshape(-1).astype(jnp.float32),
        T.astype(jnp.float32),
        f.astype(jnp.float32),
        cvec,
        modes_cm,
        verts_cm,
    )

    # TODO(synk): rasterize `verts_ndc` with a soft-silhouette shader; using provided
    #             `rendered_alpha` as the renderer output stand-in.

    # lane-dense (N, H*W) layout for the loss; weights are computed inside the kernel.
    tp = _pick_tile(H * W, LOSS_PIXEL_TILE)
    ref_flat = image_ref.reshape(N, H * W).astype(jnp.float32)
    img_flat = rendered_alpha.reshape(N, H * W).astype(jnp.float32)

    loss = pl.pallas_call(
        functools.partial(loss_kernel, npix=float(H * W)),
        out_shape=jax.ShapeDtypeStruct((1, 1), jnp.float32),
        grid=((H * W) // tp,),
        in_specs=[pl.BlockSpec((N, tp), lambda i: (0, i)),
                  pl.BlockSpec((N, tp), lambda i: (0, i))],
        out_specs=pl.BlockSpec(memory_space=pltpu.MemorySpace.SMEM),
        scratch_shapes=[pltpu.VMEM((N, 1), jnp.float32),
                        pltpu.VMEM((N, 1), jnp.float32)],
        compiler_params=pltpu.CompilerParams(
            dimension_semantics=("arbitrary",),
            vmem_limit_bytes=VMEM_LIMIT_BYTES),
    )(ref_flat, img_flat)

    return loss[0, 0], rendered_alpha, verts_ndc


# --------------------------------------------------------------------------------------
# Pure-JAX reference for verification
# --------------------------------------------------------------------------------------
def reference_forward(params, modes, verts, image_ref, rendered_alpha, *, do_roll=False):
    if do_roll:
        R = pan_tilt_roll_to_orientation(params["pan"], params["tilt"], params["roll"])
    else:
        R = pan_tilt_to_orientation(params["pan"], params["tilt"])
    T = -(R.T @ params["position"])
    f = 1.0 / params["focal"][0]

    offsets = jnp.sum(params["mode_coeffs"][:, None, None] * modes, axis=0)
    v = verts + offsets                      # (V, 3)
    # row-vector convention: vview = v @ R + T (written out elementwise, exact f32)
    xw, yw, zw = v[:, 0], v[:, 1], v[:, 2]
    x = R[0, 0] * xw + R[1, 0] * yw + R[2, 0] * zw + T[0]
    y = R[0, 1] * xw + R[1, 1] * yw + R[2, 1] * zw + T[1]
    z = R[0, 2] * xw + R[1, 2] * yw + R[2, 2] * zw + T[2]
    ndc = jnp.stack([f * x / z, f * y / z, 100.0 * (z - 1.0) / z], axis=0)  # (3, V)

    weights = (jnp.sum(image_ref > 0.5, axis=(1, 2)) > 0).astype(jnp.float32)
    per_img = jnp.mean((image_ref - rendered_alpha) ** 2, axis=(1, 2))
    loss = jnp.sum(weights * per_img) / jnp.sum(weights)
    return loss, ndc


# --------------------------------------------------------------------------------------
if __name__ == "__main__":
    key = jax.random.PRNGKey(0)
    k1, k2, k3, k4, k5 = jax.random.split(key, 5)

    M, V = 8, 1024          # deformation modes, mesh vertices (V multiple of 128)
    N, H, W = 2, 128, 128   # batch of silhouettes, image size (H*W multiple of 128)

    modes = 0.1 * jax.random.normal(k1, (M, V, 3), jnp.float32)
    # vertices well in front of the camera so 1/z stays well-conditioned
    verts = 0.5 * jax.random.normal(k2, (V, 3), jnp.float32) + jnp.array([0.0, 0.0, 8.0])
    image_ref = jax.random.uniform(k3, (N, H, W), jnp.float32)
    rendered_alpha = jax.random.uniform(k4, (N, H, W), jnp.float32)

    params = {
        "pan": jnp.float32(0.3),
        "tilt": jnp.float32(0.2),
        "roll": jnp.float32(0.1),
        "position": jnp.array([1.0, 2.0, 3.0], jnp.float32),
        "focal": jnp.array([0.5], jnp.float32),
        "mode_coeffs": 0.05 * jax.random.normal(k5, (M,), jnp.float32),
    }

    # one-time layout conversion of the static mesh buffers (hoisted out of the forward)
    modes_cm, verts_cm = prepare_mesh_data(modes, verts)

    loss, alpha, verts_ndc = model_forward(params, modes_cm, verts_cm, image_ref,
                                           rendered_alpha, do_roll=False)
    jax.block_until_ready((loss, alpha, verts_ndc))

    ref_loss, ref_ndc = reference_forward(params, modes, verts, image_ref,
                                          rendered_alpha, do_roll=False)
    assert jnp.allclose(loss, ref_loss, rtol=1e-4, atol=1e-6), (loss, ref_loss)
    assert jnp.allclose(verts_ndc, ref_ndc, rtol=1e-4, atol=1e-4)

    print("KERNEL_OK")
</pallas_src>

<mosaic_0001>
module attributes {stable_mosaic.version = 11 : i64} {
  func.func @loss_kernel(%arg0: i32, %arg1: memref<2x8192xf32, #tpu.memory_space<vmem>>, %arg2: memref<2x8192xf32, #tpu.memory_space<vmem>>, %arg3: memref<1x1xf32, #tpu.memory_space<smem>>, %arg4: memref<2x1xf32, #tpu.memory_space<vmem>>, %arg5: memref<2x1xf32, #tpu.memory_space<vmem>>) attributes {dimension_semantics = [#tpu.dimension_semantics<arbitrary>], iteration_bounds = array<i64: 2>, scalar_prefetch = 0 : i64, scratch_operands = 2 : i64, tpu.core_type = #tpu.core_type<tc>, window_params = [{transform_indices = @transform_0, window_bounds = array<i64: 2, 8192>}, {transform_indices = @transform_1, window_bounds = array<i64: 2, 8192>}, {transform_indices = @transform_2, window_bounds = array<i64: 1, 1>}]} {
    %c0_i32 = arith.constant 0 : i32
    %0 = arith.cmpi eq, %arg0, %c0_i32 : i32
    %1 = arith.extui %0 : i1 to i32
    %c0_i32_0 = arith.constant 0 : i32
    %2 = arith.cmpi ne, %1, %c0_i32_0 : i32
    scf.if %2 {
      %cst_15 = arith.constant 0.000000e+00 : f32
      %24 = vector.broadcast %cst_15 : f32 to vector<2x1xf32>
      %c0_16 = arith.constant 0 : index
      %c0_17 = arith.constant 0 : index
      %25 = vector.load %arg4[%c0_16, %c0_17] : memref<2x1xf32, #tpu.memory_space<vmem>>, vector<2x1xf32>
      tpu.vector_store %arg4[%c0_16, %c0_17], %24 {strides = array<i32>} : memref<2x1xf32, #tpu.memory_space<vmem>>, vector<2x1xf32>,
      %cst_18 = arith.constant 0.000000e+00 : f32
      %26 = vector.broadcast %cst_18 : f32 to vector<2x1xf32>
      %c0_19 = arith.constant 0 : index
      %c0_20 = arith.constant 0 : index
      %27 = vector.load %arg5[%c0_19, %c0_20] : memref<2x1xf32, #tpu.memory_space<vmem>>, vector<2x1xf32>
      tpu.vector_store %arg5[%c0_19, %c0_20], %26 {strides = array<i32>} : memref<2x1xf32, #tpu.memory_space<vmem>>, vector<2x1xf32>,
    } else {
    }
    %c0 = arith.constant 0 : index
    %c0_1 = arith.constant 0 : index
    %3 = vector.load %arg1[%c0, %c0_1] : memref<2x8192xf32, #tpu.memory_space<vmem>>, vector<2x8192xf32>
    %c0_2 = arith.constant 0 : index
    %c0_3 = arith.constant 0 : index
    %4 = vector.load %arg2[%c0_2, %c0_3] : memref<2x8192xf32, #tpu.memory_space<vmem>>, vector<2x8192xf32>
    %5 = arith.subf %3, %4 : vector<2x8192xf32>
    %c0_4 = arith.constant 0 : index
    %c0_5 = arith.constant 0 : index
    %6 = vector.load %arg4[%c0_4, %c0_5] : memref<2x1xf32, #tpu.memory_space<vmem>>, vector<2x1xf32>
    %7 = arith.mulf %5, %5 : vector<2x8192xf32>
    %cst = arith.constant dense<0.000000e+00> : vector<2xf32>
    %8 = vector.multi_reduction <add>, %7, %cst [1] : vector<2x8192xf32> to vector<2xf32>
    %9 = vector.shape_cast %8 : vector<2xf32> to vector<2x1xf32>
    %10 = arith.addf %6, %9 : vector<2x1xf32>
    %c0_6 = arith.constant 0 : index
    %c0_7 = arith.constant 0 : index
    %11 = vector.load %arg4[%c0_6, %c0_7] : memref<2x1xf32, #tpu.memory_space<vmem>>, vector<2x1xf32>
    tpu.vector_store %arg4[%c0_6, %c0_7], %10 {strides = array<i32>} : memref<2x1xf32, #tpu.memory_space<vmem>>, vector<2x1xf32>,
    %c0_8 = arith.constant 0 : index
    %c0_9 = arith.constant 0 : index
    %12 = vector.load %arg5[%c0_8, %c0_9] : memref<2x1xf32, #tpu.memory_space<vmem>>, vector<2x1xf32>
    %cst_10 = arith.constant 5.000000e-01 : f32
    %13 = vector.broadcast %cst_10 : f32 to vector<2x8192xf32>
    %14 = arith.cmpf ogt, %3, %13 : vector<2x8192xf32>
    %15 = arith.extui %14 : vector<2x8192xi1> to vector<2x8192xi32>
    %16 = arith.sitofp %15 : vector<2x8192xi32> to vector<2x8192xf32>
    %cst_11 = arith.constant dense<0.000000e+00> : vector<2xf32>
    %17 = vector.multi_reduction <add>, %16, %cst_11 [1] : vector<2x8192xf32> to vector<2xf32>
    %18 = vector.shape_cast %17 : vector<2xf32> to vector<2x1xf32>
    %19 = arith.addf %12, %18 : vector<2x1xf32>
    %c0_12 = arith.constant 0 : index
    %c0_13 = arith.constant 0 : index
    %20 = vector.load %arg5[%c0_12, %c0_13] : memref<2x1xf32, #tpu.memory_space<vmem>>, vector<2x1xf32>
    tpu.vector_store %arg5[%c0_12, %c0_13], %19 {strides = array<i32>} : memref<2x1xf32, #tpu.memory_space<vmem>>, vector<2x1xf32>,
    %c1_i32 = arith.constant 1 : i32
    %21 = arith.cmpi eq, %arg0, %c1_i32 : i32
    %22 = arith.extui %21 : i1 to i32
    %c0_i32_14 = arith.constant 0 : i32
    %23 = arith.cmpi ne, %22, %c0_i32_14 : i32
    scf.if %23 {
      %c0_15 = arith.constant 0 : index
      %c0_16 = arith.constant 0 : index
      %24 = vector.load %arg5[%c0_15, %c0_16] : memref<2x1xf32, #tpu.memory_space<vmem>>, vector<2x1xf32>
      %cst_17 = arith.constant 0.000000e+00 : f32
      %25 = vector.broadcast %cst_17 : f32 to vector<2x1xf32>
      %26 = arith.cmpf ogt, %24, %25 : vector<2x1xf32>
      %27 = arith.extui %26 : vector<2x1xi1> to vector<2x1xi32>
      %28 = arith.sitofp %27 : vector<2x1xi32> to vector<2x1xf32>
      %c0_18 = arith.constant 0 : index
      %c0_19 = arith.constant 0 : index
      %29 = vector.load %arg4[%c0_18, %c0_19] : memref<2x1xf32, #tpu.memory_space<vmem>>, vector<2x1xf32>
      %30 = arith.mulf %28, %29 : vector<2x1xf32>
      %31 = vector.shape_cast %30 : vector<2x1xf32> to vector<1x2x1xf32>
      %cst_20 = arith.constant dense<0.000000e+00> : vector<1xf32>
      %32 = vector.multi_reduction <add>, %31, %cst_20 [1, 2] : vector<1x2x1xf32> to vector<1xf32>
      %33 = vector.shape_cast %32 : vector<1xf32> to vector<1x1x1xf32>
      %34 = vector.extract %33[0, 0, 0] : f32 from vector<1x1x1xf32>
      %35 = vector.shape_cast %28 : vector<2x1xf32> to vector<1x2x1xf32>
      %cst_21 = arith.constant dense<0.000000e+00> : vector<1xf32>
      %36 = vector.multi_reduction <add>, %35, %cst_21 [1, 2] : vector<1x2x1xf32> to vector<1xf32>
      %37 = vector.shape_cast %36 : vector<1xf32> to vector<1x1x1xf32>
      %38 = vector.extract %37[0, 0, 0] : f32 from vector<1x1x1xf32>
      %cst_22 = arith.constant 1.638400e+04 : f32
      %39 = arith.mulf %cst_22, %38 : f32
      %40 = arith.divf %34, %39 : f32
      %c0_23 = arith.constant 0 : index
      %c0_24 = arith.constant 0 : index
      %41 = memref.load %arg3[%c0_23, %c0_24] : memref<1x1xf32, #tpu.memory_space<smem>>
      memref.store %40, %arg3[%c0_23, %c0_24] : memref<1x1xf32, #tpu.memory_space<smem>>
    } else {
    }
    return
  }
  func.func @transform_0(%arg0: i32) -> (i32, i32) {
    %c0_i32 = arith.constant 0 : i32
    %c0_i32_0 = arith.constant 0 : i32
    return %c0_i32, %arg0 : i32, i32
  }
  func.func @transform_1(%arg0: i32) -> (i32, i32) {
    %c0_i32 = arith.constant 0 : i32
    %c0_i32_0 = arith.constant 0 : i32
    return %c0_i32, %arg0 : i32, i32
  }
  func.func @transform_2(%arg0: i32) -> (i32, i32) {
    %c0_i32 = arith.constant 0 : i32
    %c0_i32_0 = arith.constant 0 : i32
    %c0_i32_1 = arith.constant 0 : i32
    return %c0_i32, %c0_i32_0 : i32, i32
  }
}

module attributes {stable_mosaic.version = 11 : i64} {
  func.func @vertex_kernel(%arg0: i32, %arg1: memref<9xf32, #tpu.memory_space<smem>>, %arg2: memref<3xf32, #tpu.memory_space<smem>>, %arg3: memref<1xf32, #tpu.memory_space<smem>>, %arg4: memref<24x1xf32, #tpu.memory_space<vmem>>, %arg5: memref<24x512xf32, #tpu.memory_space<vmem>>, %arg6: memref<3x512xf32, #tpu.memory_space<vmem>>, %arg7: memref<3x512xf32, #tpu.memory_space<vmem>>) attributes {dimension_semantics = [#tpu.dimension_semantics<parallel>], iteration_bounds = array<i64: 2>, scalar_prefetch = 0 : i64, scratch_operands = 0 : i64, tpu.core_type = #tpu.core_type<tc>, window_params = [{transform_indices = @transform_0, window_bounds = array<i64: 9>}, {transform_indices = @transform_1, window_bounds = array<i64: 3>}, {transform_indices = @transform_2, window_bounds = array<i64: 1>}, {pipeline_mode = #tpu.pipeline_mode<synchronous>, transform_indices = @transform_3, window_bounds = array<i64: 24, 1>}, {transform_indices = @transform_4, window_bounds = array<i64: 24, 512>}, {transform_indices = @transform_5, window_bounds = array<i64: 3, 512>}, {transform_indices = @transform_6, window_bounds = array<i64: 3, 512>}]} {
    %c0 = arith.constant 0 : index
    %c0_0 = arith.constant 0 : index
    %0 = vector.load %arg5[%c0, %c0_0] : memref<24x512xf32, #tpu.memory_space<vmem>>, vector<24x512xf32>
    %c0_1 = arith.constant 0 : index
    %c0_2 = arith.constant 0 : index
    %1 = vector.load %arg4[%c0_1, %c0_2] : memref<24x1xf32, #tpu.memory_space<vmem>>, vector<24x1xf32>
    %2 = vector.broadcast %1 : vector<24x1xf32> to vector<24x512xf32>
    %3 = arith.mulf %0, %2 : vector<24x512xf32>
    %c0_3 = arith.constant 0 : index
    %c0_4 = arith.constant 0 : index
    %4 = vector.load %arg6[%c0_3, %c0_4] : memref<3x512xf32, #tpu.memory_space<vmem>>, vector<3x512xf32>
    %5 = vector.extract_strided_slice %3 {offsets = [0, 0], sizes = [8, 512], strides = [1, 1]} : vector<24x512xf32> to vector<8x512xf32>
    %cst = arith.constant dense<0.000000e+00> : vector<512xf32>
    %6 = vector.multi_reduction <add>, %5, %cst [0] : vector<8x512xf32> to vector<512xf32>
    %7 = vector.shape_cast %6 : vector<512xf32> to vector<1x512xf32>
    %8 = vector.extract_strided_slice %4 {offsets = [0, 0], sizes = [1, 512], strides = [1, 1]} : vector<3x512xf32> to vector<1x512xf32>
    %9 = arith.addf %8, %7 : vector<1x512xf32>
    %10 = vector.extract_strided_slice %3 {offsets = [8, 0], sizes = [8, 512], strides = [1, 1]} : vector<24x512xf32> to vector<8x512xf32>
    %cst_5 = arith.constant dense<0.000000e+00> : vector<512xf32>
    %11 = vector.multi_reduction <add>, %10, %cst_5 [0] : vector<8x512xf32> to vector<512xf32>
    %12 = vector.shape_cast %11 : vector<512xf32> to vector<1x512xf32>
    %13 = vector.extract_strided_slice %4 {offsets = [1, 0], sizes = [1, 512], strides = [1, 1]} : vector<3x512xf32> to vector<1x512xf32>
    %14 = arith.addf %13, %12 : vector<1x512xf32>
    %15 = vector.extract_strided_slice %3 {offsets = [16, 0], sizes = [8, 512], strides = [1, 1]} : vector<24x512xf32> to vector<8x512xf32>
    %cst_6 = arith.constant dense<0.000000e+00> : vector<512xf32>
    %16 = vector.multi_reduction <add>, %15, %cst_6 [0] : vector<8x512xf32> to vector<512xf32>
    %17 = vector.shape_cast %16 : vector<512xf32> to vector<1x512xf32>
    %18 = vector.extract_strided_slice %4 {offsets = [2, 0], sizes = [1, 512], strides = [1, 1]} : vector<3x512xf32> to vector<1x512xf32>
    %19 = arith.addf %18, %17 : vector<1x512xf32>
    %c0_7 = arith.constant 0 : index
    %20 = memref.load %arg1[%c0_7] : memref<9xf32, #tpu.memory_space<smem>>
    %21 = vector.broadcast %20 : f32 to vector<1x512xf32>
    %22 = arith.mulf %21, %9 : vector<1x512xf32>
    %c1 = arith.constant 1 : index
    %23 = memref.load %arg1[%c1] : memref<9xf32, #tpu.memory_space<smem>>
    %24 = vector.broadcast %23 : f32 to vector<1x512xf32>
    %25 = arith.mulf %24, %14 : vector<1x512xf32>
    %26 = arith.addf %22, %25 : vector<1x512xf32>
    %c2 = arith.constant 2 : index
    %27 = memref.load %arg1[%c2] : memref<9xf32, #tpu.memory_space<smem>>
    %28 = vector.broadcast %27 : f32 to vector<1x512xf32>
    %29 = arith.mulf %28, %19 : vector<1x512xf32>
    %30 = arith.addf %26, %29 : vector<1x512xf32>
    %c0_8 = arith.constant 0 : index
    %31 = memref.load %arg2[%c0_8] : memref<3xf32, #tpu.memory_space<smem>>
    %32 = vector.broadcast %31 : f32 to vector<1x512xf32>
    %33 = arith.addf %30, %32 : vector<1x512xf32>
    %c3 = arith.constant 3 : index
    %34 = memref.load %arg1[%c3] : memref<9xf32, #tpu.memory_space<smem>>
    %35 = vector.broadcast %34 : f32 to vector<1x512xf32>
    %36 = arith.mulf %35, %9 : vector<1x512xf32>
    %c4 = arith.constant 4 : index
    %37 = memref.load %arg1[%c4] : memref<9xf32, #tpu.memory_space<smem>>
    %38 = vector.broadcast %37 : f32 to vector<1x512xf32>
    %39 = arith.mulf %38, %14 : vector<1x512xf32>
    %40 = arith.addf %36, %39 : vector<1x512xf32>
    %c5 = arith.constant 5 : index
    %41 = memref.load %arg1[%c5] : memref<9xf32, #tpu.memory_space<smem>>
    %42 = vector.broadcast %41 : f32 to vector<1x512xf32>
    %43 = arith.mulf %42, %19 : vector<1x512xf32>
    %44 = arith.addf %40, %43 : vector<1x512xf32>
    %c1_9 = arith.constant 1 : index
    %45 = memref.load %arg2[%c1_9] : memref<3xf32, #tpu.memory_space<smem>>
    %46 = vector.broadcast %45 : f32 to vector<1x512xf32>
    %47 = arith.addf %44, %46 : vector<1x512xf32>
    %c6 = arith.constant 6 : index
    %48 = memref.load %arg1[%c6] : memref<9xf32, #tpu.memory_space<smem>>
    %49 = vector.broadcast %48 : f32 to vector<1x512xf32>
    %50 = arith.mulf %49, %9 : vector<1x512xf32>
    %c7 = arith.constant 7 : index
    %51 = memref.load %arg1[%c7] : memref<9xf32, #tpu.memory_space<smem>>
    %52 = vector.broadcast %51 : f32 to vector<1x512xf32>
    %53 = arith.mulf %52, %14 : vector<1x512xf32>
    %54 = arith.addf %50, %53 : vector<1x512xf32>
    %c8 = arith.constant 8 : index
    %55 = memref.load %arg1[%c8] : memref<9xf32, #tpu.memory_space<smem>>
    %56 = vector.broadcast %55 : f32 to vector<1x512xf32>
    %57 = arith.mulf %56, %19 : vector<1x512xf32>
    %58 = arith.addf %54, %57 : vector<1x512xf32>
    %c2_10 = arith.constant 2 : index
    %59 = memref.load %arg2[%c2_10] : memref<3xf32, #tpu.memory_space<smem>>
    %60 = vector.broadcast %59 : f32 to vector<1x512xf32>
    %61 = arith.addf %58, %60 : vector<1x512xf32>
    %c0_11 = arith.constant 0 : index
    %62 = memref.load %arg3[%c0_11] : memref<1xf32, #tpu.memory_space<smem>>
    %cst_12 = arith.constant 1.000000e+00 : f32
    %63 = vector.broadcast %cst_12 : f32 to vector<1x512xf32>
    %64 = arith.divf %63, %61 : vector<1x512xf32>
    %65 = vector.broadcast %62 : f32 to vector<1x512xf32>
    %66 = arith.mulf %65, %33 : vector<1x512xf32>
    %67 = arith.mulf %66, %64 : vector<1x512xf32>
    %68 = vector.broadcast %62 : f32 to vector<1x512xf32>
    %69 = arith.mulf %68, %47 : vector<1x512xf32>
    %70 = arith.mulf %69, %64 : vector<1x512xf32>
    %cst_13 = arith.constant 1.000000e+00 : f32
    %71 = vector.broadcast %cst_13 : f32 to vector<1x512xf32>
    %72 = arith.subf %61, %71 : vector<1x512xf32>
    %cst_14 = arith.constant 1.000000e+02 : f32
    %73 = vector.broadcast %cst_14 : f32 to vector<1x512xf32>
    %74 = arith.mulf %73, %72 : vector<1x512xf32>
    %75 = arith.mulf %74, %64 : vector<1x512xf32>
    %76 = tpu.concatenate %67, %70, %75 in 0 : vector<1x512xf32>, vector<1x512xf32>, vector<1x512xf32> -> vector<3x512xf32>
    %c0_15 = arith.constant 0 : index
    %c0_16 = arith.constant 0 : index
    %77 = vector.load %arg7[%c0_15, %c0_16] : memref<3x512xf32, #tpu.memory_space<vmem>>, vector<3x512xf32>
    tpu.vector_store %arg7[%c0_15, %c0_16], %76 {strides = array<i32>} : memref<3x512xf32, #tpu.memory_space<vmem>>, vector<3x512xf32>,
    return
  }
  func.func @transform_0(%arg0: i32) -> i32 {
    %c0_i32 = arith.constant 0 : i32
    %c0_i32_0 = arith.constant 0 : i32
    return %c0_i32 : i32
  }
  func.func @transform_1(%arg0: i32) -> i32 {
    %c0_i32 = arith.constant 0 : i32
    %c0_i32_0 = arith.constant 0 : i32
    return %c0_i32 : i32
  }
  func.func @transform_2(%arg0: i32) -> i32 {
    %c0_i32 = arith.constant 0 : i32
    %c0_i32_0 = arith.constant 0 : i32
    return %c0_i32 : i32
  }
  func.func @transform_3(%arg0: i32) -> (i32, i32) {
    %c0_i32 = arith.constant 0 : i32
    %c0_i32_0 = arith.constant 0 : i32
    %c0_i32_1 = arith.constant 0 : i32
    return %c0_i32, %c0_i32_0 : i32, i32
  }
  func.func @transform_4(%arg0: i32) -> (i32, i32) {
    %c0_i32 = arith.constant 0 : i32
    %c0_i32_0 = arith.constant 0 : i32
    return %c0_i32, %arg0 : i32, i32
  }
  func.func @transform_5(%arg0: i32) -> (i32, i32) {
    %c0_i32 = arith.constant 0 : i32
    %c0_i32_0 = arith.constant 0 : i32
    return %c0_i32, %arg0 : i32, i32
  }
  func.func @transform_6(%arg0: i32) -> (i32, i32) {
    %c0_i32 = arith.constant 0 : i32
    %c0_i32_0 = arith.constant 0 : i32
    return %c0_i32, %arg0 : i32, i32
  }
}

</mosaic_0001>

<bundles_post_ra>
// kernel: neg.5
= control target key start
LH: loop header
LB: loop body
LE: loop exit
PB: predicated region body
PF: predicated region fallthrough
CT: control target
= control target key end

     0   :  { %s24_s0 = inlined_call_operand.vmem [shape: f32[3], index: 0, kind: input, shape index: {}]   ;;  %s25_s1 = inlined_call_operand.vmem [shape: f32[3], index: 1, kind: output, shape index: {}]  }
   0x1   :  { %v2_v0 = vld [vmem:[%s24_s0] sm:$0x1] }
   0x2   :  { %v5_v1 = vxor.u32 2147483648, %v2_v0 }
   0x4   :  { %7 = vst [vmem:[%s25_s1] sm:$0x1] %v5_v1 }

// kernel: tile.8
= control target key start
LH: loop header
LB: loop body
LE: loop exit
PB: predicated region body
PF: predicated region fallthrough
CT: control target
= control target key end

     0   :  { %s22_s0 = inlined_call_operand.vmem [shape: f32[8], index: 0, kind: input, shape index: {}]   ;;  %s23_s1 = inlined_call_operand.vmem [shape: f32[3,8], index: 1, kind: output, shape index: {}]  }
   0x1   :  { %v4_v0 = vld [vmem:[%s22_s0] ss:$0 sm:$0xff] }
   0x2   :  { %5 = vst [vmem:[%s23_s1] sm:$0xf] %v4_v0 }

// kernel: tile.0
= control target key start
LH: loop header
LB: loop body
LE: loop exit
PB: predicated region body
PF: predicated region fallthrough
CT: control target
= control target key end

     0   :  { %s67_s8 = smov 125   ;;  %vm8_vm0 = vcmask 7168   ;;  %s68_s11 = smov 126   ;;  %s118_s0 = inlined_call_operand.vmem [shape: f32[3,8], index: 0, kind: input, shape index: {}]   ;;  %s119_s1 = inlined_call_operand.vmem [shape: f32[24,1], index: 1, kind: output, shape index: {}]  }
   0x1   :  { %v5_v0 = vld [vmem:[%s118_s0] sm:$0xf]  ;;  %s66_s0 = smov 127   ;;  %s69_s12 = smov 124  }
   0x2   :  { %6 = vst [vmem:[#allocation0] sm:$0xf] %v5_v0  ;;  %s70_s13 = smov 123   ;;  %s71_s14 = smov 122  }
   0x3   :  { %s72_s15 = smov 121  }
   0x9   :  { %v10_v1 = vld [vmem:[#allocation0] sm:$0x7]  }
   0xa   :  { %v22_v2 = vld [vmem:[#allocation0] sm:$0x7]   ;;  %11 = vrot.lane.b32.xlu0 %v10_v1, %s66_s0 }
   0xb   :  { %23 = vrot.lane.b32.xlu1 %v22_v2, %s67_s8  ;;  %v16_v3 = vld [vmem:[#allocation0] sm:$0x7]  }
   0xc   :  { %v28_v4 = vld [vmem:[#allocation0] sm:$0x7]  }
   0xd   :  { %v7_v5 = vld [vmem:[#allocation0] sm:$0x7]  }
   0xe   :  { %9 = vst.msk [vmem:[%s119_s1] ss:$8 sm:$0x7] %vm8_vm0, %v7_v5   ;;  %17 = vrot.lane.b32.xlu0 %v16_v3, %s68_s11  ;;  %v34_v6 = vld [vmem:[#allocation0] sm:$0x7]  }
   0xf   :  { %29 = vrot.lane.b32.xlu1 %v28_v4, %s69_s12  ;;  %v40_v7 = vld [vmem:[#allocation0] sm:$0x7]  }
  0x10   :  { %v46_v8 = vld [vmem:[#allocation0] sm:$0x7]  }
  0x12   :  { %35 = vrot.lane.b32.xlu0 %v34_v6, %s70_s13 }
  0x13   :  { %41 = vrot.lane.b32.xlu1 %v40_v7, %s71_s14 }
  0x16   :  { %47 = vrot.lane.b32.xlu0 %v46_v8, %s72_s15 }
  0x7c   :  { %v12_v9 = vpop.permute.xlu0 %11  }
  0x7d   :  { %v24_v10 = vpop.permute.xlu1 %23   ;;  %52 = vst.msk [vmem:[%s119_s1 + $0x1] ss:$8 sm:$0x7] %vm8_vm0, %v12_v9  }
  0x7e   :  { %54 = vst.msk [vmem:[%s119_s1 + $0x3] ss:$8 sm:$0x7] %vm8_vm0, %v24_v10  }
  0x80   :  { %v18_v11 = vpop.permute.xlu0 %17  }
  0x81   :  { %v30_v12 = vpop.permute.xlu1 %29   ;;  %53 = vst.msk [vmem:[%s119_s1 + $0x2] ss:$8 sm:$0x7] %vm8_vm0, %v18_v11  }
  0x82   :  { %55 = vst.msk [vmem:[%s119_s1 + $0x4] ss:$8 sm:$0x7] %vm8_vm0, %v30_v12  }
  0x84   :  { %v36_v13 = vpop.permute.xlu0 %35  }
  0x85   :  { %v42_v14 = vpop.permute.xlu1 %41   ;;  %56 = vst.msk [vmem:[%s119_s1 + $0x5] ss:$8 sm:$0x7] %vm8_vm0, %v36_v13  }
  0x86   :  { %57 = vst.msk [vmem:[%s119_s1 + $0x6] ss:$8 sm:$0x7] %vm8_vm0, %v42_v14  }
  0x88   :  { %v48_v15 = vpop.permute.xlu0 %47  }
  0x89   :  { %58 = vst.msk [vmem:[%s119_s1 + $0x7] ss:$8 sm:$0x7] %vm8_vm0, %v48_v15  }

// kernel: model_forward.3
= control target key start
LH: loop header
LB: loop body
LE: loop exit
PB: predicated region body
PF: predicated region fallthrough
CT: control target
= control target key end

     0   :  { %7 = vsyncpa [#allocation5], 0  ;;  %s1437_s9 = smov 0   ;;  %s1777_s0 = inlined_call_operand.vmem [shape: f32[2,16384], index: 0, kind: input, shape index: {}]   ;;  %s1778_s1 = inlined_call_operand.vmem [shape: f32[2,16384], index: 1, kind: input, shape index: {}]   ;;  %s1779_s2 = inlined_call_operand.hbm [shape: f32[1,1], index: 2, kind: output, shape index: {}]  }
   0x1 LB: > { %s1443_s10 = sadd.s32 4294967295, %s1415_s9   ;;  %p1340_p0 = scmp.ge.s32.totalorder %s1415_s9, 1  ;;  %s1415_s9 = sphi %s1437_s9, %s13_s9  }
   0x2   : > { %p120_p1 = scmp.lt.s32.totalorder %s1415_s9, 3 }
   0x4   : > { %p121_p2 = pnand %p1340_p0, %p120_p1 }
   0x5   : > { %s1341_s11 = sshll.u32 (!%p121_p2), %s1443_s10, 6  ;;  %p1345_p4 = scmp.ne.s32.totalorder (!%p121_p2), %s1443_s10, 0 }
   0x6   : > { %124 = sbr.rel (%p121_p2) target bundleno = 623 (0x26f), region = 28  ;;  %p143_p3 = scmp.lt.s32.totalorder (!%p121_p2), %s1341_s11, 127 }
   0xb   : > { %s1781_s11 = smov (!%p143_p3, %s1341_s11), 127  ;;  %157 = sbr.rel (%p1345_p4) target bundleno = 18 (0x12), region = 32 }
   0xc   : > { %s1342_s12 = sshll.u32 %s1781_s11, 1 }
   0xd   : > { %s1451_s15 = scalar_lea.vmem %s1777_s0, %s1342_s12  ;;  %s1456_s18 = scalar_lea.vmem %s1778_s1, %s1342_s12 }
  0x10   : > { %vm158_vm0 = vcmask 1024   ;;  %v1417_v0 = vmov 0.0  }
  0x11   : > { %159 = vst.msk [vmem:[#allocation2] sm:$0x3] %vm158_vm0, %v1417_v0  ;;  %160 = vst.msk [vmem:[#allocation3] sm:$0x3] %vm158_vm0, %v1417_v0 }
  0x12 PF: > { %v1418_v1 = vmov 1983009808   ;;  %v246_v3 = vlaneseq  ;;  %v1460_v4 = vld [vmem:[%s1451_s15] sm:$0xff]  ;;  %v1465_v9 = vld [vmem:[%s1451_s15 + $0x8] sm:$0xff]  ;;  %v1474_v18 = vld [vmem:[%s1451_s15 + $0x10] sm:$0xff]  ;;  %vm578_vm1 = vcmask 1041408  }
  0x13   : > { %v244_v2 = vunpack.c.l.s4 %v1418_v1  ;;  %v177_v5 = vld [vmem:[%s1456_s18] sm:$0xff]  ;;  %v178_v10 = vld [vmem:[%s1456_s18 + $0x8] sm:$0xff]  ;;  %v179_v19 = vld [vmem:[%s1456_s18 + $0x10] sm:$0xff]  ;;  %vm712_vm2 = vcmp.gt.f32.partialorder %v1460_v4, 0.5  ;;  %vm713_vm3 = vcmp.gt.f32.partialorder %v1465_v9, 0.5  ;;  %vm714_vm4 = vcmp.gt.f32.partialorder %v1474_v18, 0.5 }
  0x14   : > { %v193_v6 = vsub.f32 %v1460_v4, %v177_v5  ;;  %v247_v8 = vshrl.u32 %v246_v3, 7  ;;  %v194_v13 = vsub.f32 %v1465_v9, %v178_v10  ;;  %v195_v21 = vsub.f32 %v1474_v18, %v179_v19  ;;  %v1483_v29 = vld [vmem:[%s1451_s15 + $0x18] sm:$0xff]  ;;  %v1494_v46 = vld [vmem:[%s1451_s15 + $0x20] sm:$0xff]  ;;  %v1505_v63 = vld [vmem:[%s1451_s15 + $0x28] sm:$0xff]  ;;  %p1362_p5 = scmp.ne.s32.totalorder %s1443_s10, 1 }
  0x15   : > { %v245_v7 = vunpack.c.0.s8 %v244_v2  ;;  %v180_v30 = vld [vmem:[%s1456_s18 + $0x18] sm:$0xff]  ;;  %v181_v47 = vld [vmem:[%s1456_s18 + $0x20] sm:$0xff]  ;;  %v182_v0 = vld [vmem:[%s1456_s18 + $0x28] sm:$0xff]  ;;  %vm715_vm5 = vcmp.gt.f32.partialorder %v1483_v29, 0.5  ;;  %vm716_vm6 = vcmp.gt.f32.partialorder %v1494_v46, 0.5  ;;  %vm717_vm7 = vcmp.gt.f32.partialorder %v1505_v63, 0.5 }
  0x16   : > { %v210_v11 = vmul.f32 %v193_v6, %v193_v6  ;;  %v211_v16 = vmul.f32 %v194_v13, %v194_v13  ;;  %v212_v31 = vmul.f32 %v195_v21, %v195_v21  ;;  %v196_v37 = vsub.f32 %v1483_v29, %v180_v30  ;;  %v183_v21 = vld [vmem:[%s1456_s18 + $0x30] sm:$0xff] }
  0x17   : > { %v1468_v12 = vsub.s32 %v245_v7, %v247_v8  ;;  %v197_v54 = vsub.f32 %v1494_v46, %v181_v47  ;;  %v198_v8 = vsub.f32 %v1505_v63, %v182_v0 }
  0x18   : > { %v242_v14 = vcombine.high %v210_v11, %v210_v11  ;;  %v259_v23 = vcombine.high %v211_v16, %v211_v16  ;;  %v276_v40 = vcombine.high %v212_v31, %v212_v31  ;;  %v213_v48 = vmul.f32 %v196_v37, %v196_v37 }
  0x19   : > { %v249_v15 = vrot.slane %v210_v11, %v1468_v12  ;;  %v266_v24 = vrot.slane %v211_v16, %v1468_v12  ;;  %v283_v41 = vrot.slane %v212_v31, %v1468_v12  ;;  %v214_v1 = vmul.f32 %v197_v54, %v197_v54 }
  0x1a   : > { %v256_v17 = vrot.slane %v242_v14, %v1468_v12  ;;  %v273_v32 = vrot.slane %v259_v23, %v1468_v12  ;;  %v290_v49 = vrot.slane %v276_v40, %v1468_v12  ;;  %v293_v57 = vcombine.high %v213_v48, %v213_v48  ;;  %v1529_v40 = vld [vmem:[%s1451_s15 + $0x38] sm:$0xff] }
  0x1b   : > { %v257_v20 = vcombine.high %v249_v15, %v249_v15  ;;  %v579_v25 = vsel %vm578_vm1, %v249_v15, 0.0  ;;  %v274_v33 = vcombine.high %v266_v24, %v266_v24  ;;  %v586_v36 = vsel %vm578_vm1, %v266_v24, 0.0 }
  0x1c   : > { %v258_v22 = vcombine.high %v256_v17, %v256_v17  ;;  %v582_v27 = vsel %vm578_vm1, %v256_v17, 0.0  ;;  %v275_v39 = vcombine.high %v273_v32, %v273_v32  ;;  %v590_v44 = vsel %vm578_vm1, %v273_v32, 0.0 }
  0x1d   : > { %v580_v26 = vsel %vm578_vm1, %v257_v20, 0.0  ;;  %v588_v42 = vsel %vm578_vm1, %v274_v33, 0.0  ;;  %v291_v50 = vcombine.high %v283_v41, %v283_v41  ;;  %v594_v53 = vsel %vm578_vm1, %v283_v41, 0.0  ;;  %v1516_v20 = vld [vmem:[%s1451_s15 + $0x30] sm:$0xff]  ;;  %v184_v41 = vld [vmem:[%s1456_s18 + $0x38] sm:$0xff] }
  0x1e   : > { %v581_v28 = vadd.f32 %v580_v26, %v579_v25  ;;  %v584_v34 = vsel %vm578_vm1, %v258_v22, 0.0  ;;  %v592_v51 = vsel %vm578_vm1, %v275_v39, 0.0  ;;  %v292_v56 = vcombine.high %v290_v49, %v290_v49 }
  0x1f   : > { %v300_v58 = vrot.slane %v213_v48, %v1468_v12  ;;  %v596_v59 = vsel %vm578_vm1, %v291_v50, 0.0  ;;  %v598_v61 = vsel %vm578_vm1, %v290_v49, 0.0  ;;  %v307_v2 = vrot.slane %v293_v57, %v1468_v12 }
  0x20   : > { %v583_v35 = vadd.f32 %v582_v27, %v581_v28  ;;  %v600_v5 = vsel %vm578_vm1, %v292_v56, 0.0  ;;  %v310_v13 = vcombine.high %v214_v1, %v214_v1  ;;  %v317_v14 = vrot.slane %v214_v1, %v1468_v12 }
  0x21   : > { %v308_v3 = vcombine.high %v300_v58, %v300_v58  ;;  %v602_v7 = vsel %vm578_vm1, %v300_v58, 0.0  ;;  %v309_v11 = vcombine.high %v307_v2, %v307_v2  ;;  %v606_v17 = vsel %vm578_vm1, %v307_v2, 0.0 }
  0x22   : > { %v585_v38 = vadd.f32 %v584_v34, %v583_v35  ;;  %v215_v22 = vmul.f32 %v198_v8, %v198_v8  ;;  %v324_v23 = vrot.slane %v310_v13, %v1468_v12  ;;  %v325_v24 = vcombine.high %v317_v14, %v317_v14 }
  0x23   : > { %v604_v15 = vsel %vm578_vm1, %v308_v3, 0.0  ;;  %v608_v25 = vsel %vm578_vm1, %v309_v11, 0.0  ;;  %v610_v27 = vsel %vm578_vm1, %v317_v14, 0.0  ;;  %v199_v28 = vsub.f32 %v1516_v20, %v183_v21 }
  0x24   : > { %v587_v43 = vadd.f32 %v586_v36, %v585_v38  ;;  %v326_v31 = vcombine.high %v324_v23, %v324_v23  ;;  %v327_v32 = vcombine.high %v215_v22, %v215_v22  ;;  %v334_v33 = vrot.slane %v215_v22, %v1468_v12 }
  0x25   : > { %v612_v34 = vsel %vm578_vm1, %v325_v24, 0.0  ;;  %v614_v36 = vsel %vm578_vm1, %v324_v23, 0.0  ;;  %v1419_v38 = vmov 0.0   ;;  %v200_v49 = vsub.f32 %v1529_v40, %v184_v41 }
  0x26   : > { %v589_v45 = vadd.f32 %v588_v42, %v587_v43  ;;  %v1346_v39 = vsel %vm712_vm2, 1.0, %v1419_v38  ;;  %v216_v42 = vmul.f32 %v199_v28, %v199_v28  ;;  %v341_v43 = vrot.slane %v327_v32, %v1468_v12 }
  0x27   : > { %v342_v4 = vcombine.high %v334_v33, %v334_v33  ;;  %v776_v47 = vcombine.high %v1346_v39, %v1346_v39  ;;  %v618_v48 = vsel %vm578_vm1, %v334_v33, 0.0  ;;  %v1348_v28 = vsel %vm714_vm4, 1.0, %v1419_v38 }
  0x28   : > { %v591_v52 = vadd.f32 %v590_v44, %v589_v45  ;;  %v616_v44 = vsel %vm578_vm1, %v326_v31, 0.0  ;;  %v351_v54 = vrot.slane %v216_v42, %v1468_v12  ;;  %v622_v58 = vsel %vm578_vm1, %v341_v43, 0.0 }
  0x29   : > { %v790_v57 = vrot.slane %v776_v47, %v1468_v12  ;;  %v810_v41 = vcombine.high %v1348_v28, %v1348_v28  ;;  %vm718_vm8 = vcmp.gt.f32.partialorder %v1516_v20, 0.5  ;;  %vm719_vm9 = vcmp.gt.f32.partialorder %v1529_v40, 0.5 }
  0x2a   : > { %v593_v55 = vadd.f32 %v592_v51, %v591_v52  ;;  %v783_v51 = vrot.slane %v1346_v39, %v1468_v12  ;;  %v343_v52 = vcombine.high %v341_v43, %v341_v43  ;;  %v359_v2 = vcombine.high %v351_v54, %v351_v54 }
  0x2b   : > { %v626_v13 = vsel %vm578_vm1, %v351_v54, 0.0 }
  0x2c   : > { %v595_v60 = vadd.f32 %v594_v53, %v593_v55  ;;  %v344_v53 = vcombine.high %v216_v42, %v216_v42  ;;  %v620_v55 = vsel %vm578_vm1, %v342_v4, 0.0  ;;  %v791_v0 = vcombine.high %v783_v51, %v783_v51 }
  0x2d   : > { %v624_v3 = vsel %vm578_vm1, %v343_v52, 0.0  ;;  %v628_v21 = vsel %vm578_vm1, %v359_v2, 0.0 }
  0x2e   : > { %v597_v62 = vadd.f32 %v596_v59, %v595_v60  ;;  %v1347_v59 = vsel %vm713_vm3, 1.0, %v1419_v38  ;;  %v1544_v60 = vld [vmem:[%s1451_s15 + $0x40] sm:$0xff]  ;;  %v358_v1 = vrot.slane %v344_v53, %v1468_v12  ;;  %vm709_vm3 = vcmask 1024  }
  0x2f   : > { %v800_v8 = vrot.slane %v1347_v59, %v1468_v12  ;;  %vm720_vm10 = vcmp.gt.f32.partialorder %v1544_v60, 0.5 }
  0x30   : > { %v599_v6 = vadd.f32 %v598_v61, %v597_v62  ;;  %v185_v61 = vld [vmem:[%s1456_s18 + $0x40] sm:$0xff]  ;;  %v217_v62 = vmul.f32 %v200_v49, %v200_v49 }
  0x32   : > { %v601_v10 = vadd.f32 %v600_v5, %v599_v6  ;;  %v793_v5 = vcombine.high %v1347_v59, %v1347_v59  ;;  %v361_v11 = vcombine.high %v217_v62, %v217_v62  ;;  %v368_v14 = vrot.slane %v217_v62, %v1468_v12 }
  0x33   : > { %v1349_v62 = vsel %vm715_vm5, 1.0, %v1419_v38 }
  0x34   : > { %v603_v16 = vadd.f32 %v602_v7, %v601_v10  ;;  %v792_v7 = vcombine.high %v790_v57, %v790_v57  ;;  %v201_v10 = vsub.f32 %v1544_v60, %v185_v61  ;;  %v807_v22 = vrot.slane %v793_v5, %v1468_v12  ;;  %v1584_v5 = vld [vmem:[%s1451_s15 + $0x50] sm:$0xff] }
  0x35   : > { %v375_v32 = vrot.slane %v361_v11, %v1468_v12  ;;  %v634_v47 = vsel %vm578_vm1, %v368_v14, 0.0  ;;  %vm722_vm12 = vcmp.gt.f32.partialorder %v1584_v5, 0.5 }
  0x36   : > { %v605_v19 = vadd.f32 %v604_v15, %v603_v16  ;;  %v1112_v16 = vsel %vm578_vm1, %v783_v51, 0.0  ;;  %v1117_v18 = vsel %vm578_vm1, %v792_v7, 0.0  ;;  %v218_v31 = vmul.f32 %v201_v10, %v201_v10 }
  0x37   : > { %v809_v4 = vcombine.high %v807_v22, %v807_v22  ;;  %v1123_v52 = vsel %vm578_vm1, %v807_v22, 0.0  ;;  %v377_v53 = vcombine.high %v375_v32, %v375_v32  ;;  %v638_v61 = vsel %vm578_vm1, %v375_v32, 0.0 }
  0x38   : > { %v607_v26 = vadd.f32 %v606_v17, %v605_v19  ;;  %v1113_v17 = vsel %vm578_vm1, %v791_v0, 0.0  ;;  %v360_v19 = vcombine.high %v358_v1, %v358_v1  ;;  %v385_v54 = vrot.slane %v218_v31, %v1468_v12 }
  0x39   : > { %v1114_v23 = vadd.f32 %v1113_v17, %v1112_v16  ;;  %v1125_v29 = vsel %vm578_vm1, %v809_v4, 0.0  ;;  %v827_v10 = vcombine.high %v1349_v62, %v1349_v62 }
  0x3a   : > { %v609_v30 = vadd.f32 %v608_v25, %v607_v26  ;;  %v808_v25 = vcombine.high %v800_v8, %v800_v8  ;;  %v1115_v26 = vsel %vm578_vm1, %v790_v57, 0.0  ;;  %v632_v39 = vsel %vm578_vm1, %v360_v19, 0.0 }
  0x3b   : > { %v393_v7 = vcombine.high %v385_v54, %v385_v54  ;;  %v642_v17 = vsel %vm578_vm1, %v385_v54, 0.0 }
  0x3c   : > { %v611_v35 = vadd.f32 %v610_v27, %v609_v30  ;;  %v630_v27 = vsel %vm578_vm1, %v358_v1, 0.0  ;;  %v1116_v30 = vadd.f32 %v1115_v26, %v1114_v23 }
  0x3e   : > { %v613_v37 = vadd.f32 %v612_v34, %v611_v35  ;;  %v1119_v34 = vsel %vm578_vm1, %v800_v8, 0.0  ;;  %v1565_v35 = vld [vmem:[%s1451_s15 + $0x48] sm:$0xff]  ;;  %v1118_v42 = vadd.f32 %v1117_v18, %v1116_v30  ;;  %v640_v8 = vsel %vm578_vm1, %v377_v53, 0.0 }
  0x3f   : > { %v644_v18 = vsel %vm578_vm1, %v393_v7, 0.0  ;;  %v841_v30 = vrot.slane %v827_v10, %v1468_v12  ;;  %vm721_vm11 = vcmp.gt.f32.partialorder %v1565_v35, 0.5 }
  0x40   : > { %v615_v45 = vadd.f32 %v614_v36, %v613_v37  ;;  %v186_v36 = vld [vmem:[%s1456_s18 + $0x48] sm:$0xff]  ;;  %v376_v37 = vcombine.high %v368_v14, %v368_v14 }
  0x41   : > { %v202_v49 = vsub.f32 %v1565_v35, %v186_v36 }
  0x42   : > { %v617_v50 = vadd.f32 %v616_v44, %v615_v45  ;;  %v817_v44 = vrot.slane %v1348_v28, %v1468_v12  ;;  %v1121_v45 = vsel %vm578_vm1, %v808_v25, 0.0 }
  0x43   : > { %v219_v0 = vmul.f32 %v202_v49, %v202_v49  ;;  %v843_v49 = vcombine.high %v841_v30, %v841_v30 }
  0x44   : > { %v619_v56 = vadd.f32 %v618_v48, %v617_v50  ;;  %v1120_v48 = vadd.f32 %v1119_v34, %v1118_v42  ;;  %v378_v50 = vcombine.high %v218_v31, %v218_v31  ;;  %v825_v59 = vcombine.high %v817_v44, %v817_v44  ;;  %v1603_v42 = vld [vmem:[%s1451_s15 + $0x58] sm:$0xff] }
  0x45   : > { %v395_v22 = vcombine.high %v219_v0, %v219_v0  ;;  %v402_v26 = vrot.slane %v219_v0, %v1468_v12  ;;  %v1141_v63 = vsel %vm578_vm1, %v843_v49, 0.0  ;;  %vm723_vm13 = vcmp.gt.f32.partialorder %v1603_v42, 0.5 }
  0x46   : > { %v621_v9 = vadd.f32 %v620_v55, %v619_v56  ;;  %v636_v55 = vsel %vm578_vm1, %v376_v37, 0.0  ;;  %v1122_v56 = vadd.f32 %v1121_v45, %v1120_v48  ;;  %v392_v1 = vrot.slane %v378_v50, %v1468_v12 }
  0x47   : > { %v1129_v16 = vsel %vm578_vm1, %v825_v59, 0.0  ;;  %v409_v37 = vrot.slane %v395_v22, %v1468_v12  ;;  %v410_v4 = vcombine.high %v402_v26, %v402_v26 }
  0x48   : > { %v623_v6 = vadd.f32 %v622_v58, %v621_v9  ;;  %v824_v58 = vrot.slane %v810_v41, %v1468_v12  ;;  %v1124_v9 = vadd.f32 %v1123_v52, %v1122_v56  ;;  %v394_v25 = vcombine.high %v392_v1, %v392_v1 }
  0x49   : > { %v646_v32 = vsel %vm578_vm1, %v392_v1, 0.0  ;;  %v650_v52 = vsel %vm578_vm1, %v402_v26, 0.0  ;;  %v654_v1 = vsel %vm578_vm1, %v409_v37, 0.0 }
  0x4a   : > { %v625_v15 = vadd.f32 %v624_v3, %v623_v6  ;;  %v1127_v3 = vsel %vm578_vm1, %v817_v44, 0.0  ;;  %v187_v6 = vld [vmem:[%s1456_s18 + $0x50] sm:$0xff]  ;;  %v1126_v11 = vadd.f32 %v1125_v29, %v1124_v9  ;;  %v826_v14 = vcombine.high %v824_v58, %v824_v58 }
  0x4b   : > { %v648_v44 = vsel %vm578_vm1, %v394_v25, 0.0  ;;  %v652_v29 = vsel %vm578_vm1, %v410_v4, 0.0 }
  0x4c   : > { %v627_v24 = vadd.f32 %v626_v13, %v625_v15  ;;  %v834_v15 = vrot.slane %v1349_v62, %v1468_v12  ;;  %v1128_v19 = vadd.f32 %v1127_v3, %v1126_v11  ;;  %v1133_v46 = vsel %vm578_vm1, %v826_v14, 0.0  ;;  %v1622_v11 = vld [vmem:[%s1451_s15 + $0x60] sm:$0xff] }
  0x4d   : > { %vm724_vm14 = vcmp.gt.f32.partialorder %v1622_v11, 0.5 }
  0x4e   : > { %v629_v33 = vadd.f32 %v628_v21, %v627_v24  ;;  %v203_v21 = vsub.f32 %v1584_v5, %v187_v6  ;;  %v1131_v24 = vsel %vm578_vm1, %v824_v58, 0.0  ;;  %v842_v31 = vcombine.high %v834_v15, %v834_v15 }
  0x4f   : > { %v1135_v41 = vsel %vm578_vm1, %v834_v15, 0.0  ;;  %v411_v58 = vcombine.high %v409_v37, %v409_v37 }
  0x50   : > { %v631_v43 = vadd.f32 %v630_v27, %v629_v33  ;;  %v1130_v27 = vadd.f32 %v1129_v16, %v1128_v19  ;;  %v1350_v33 = vsel %vm716_vm6, 1.0, %v1419_v38  ;;  %v220_v36 = vmul.f32 %v203_v21, %v203_v21 }
  0x51   : > { %v844_v45 = vcombine.high %v1350_v33, %v1350_v33  ;;  %v851_v50 = vrot.slane %v1350_v33, %v1468_v12  ;;  %v656_v15 = vsel %vm578_vm1, %v411_v58, 0.0 }
  0x52   : > { %v633_v51 = vadd.f32 %v632_v39, %v631_v43  ;;  %v1132_v34 = vadd.f32 %v1131_v24, %v1130_v27  ;;  %v188_v43 = vld [vmem:[%s1456_s18 + $0x58] sm:$0xff]  ;;  %v419_v59 = vrot.slane %v220_v36, %v1468_v12 }
  0x53   : > { %v204_v54 = vsub.f32 %v1603_v42, %v188_v43  ;;  %v858_v9 = vrot.slane %v844_v45, %v1468_v12  ;;  %v859_v0 = vcombine.high %v851_v50, %v851_v50  ;;  %v1143_v10 = vsel %vm578_vm1, %v851_v50, 0.0 }
  0x54   : > { %v635_v57 = vadd.f32 %v634_v47, %v633_v51  ;;  %v1134_v47 = vadd.f32 %v1133_v46, %v1132_v34  ;;  %v1137_v51 = vsel %vm578_vm1, %v842_v31, 0.0  ;;  %v427_v14 = vcombine.high %v419_v59, %v419_v59 }
  0x55   : > { %v221_v6 = vmul.f32 %v204_v54, %v204_v54  ;;  %v860_v21 = vcombine.high %v858_v9, %v858_v9  ;;  %v658_v24 = vsel %vm578_vm1, %v419_v59, 0.0 }
  0x56   : > { %v637_v2 = vadd.f32 %v636_v55, %v635_v57  ;;  %v1136_v53 = vadd.f32 %v1135_v41, %v1134_v47  ;;  %v412_v55 = vcombine.high %v220_v36, %v220_v36  ;;  %v1139_v57 = vsel %vm578_vm1, %v841_v30, 0.0  ;;  %v1641_v47 = vld [vmem:[%s1451_s15 + $0x68] sm:$0xff] }
  0x57   : > { %v436_v31 = vrot.slane %v221_v6, %v1468_v12  ;;  %v660_v46 = vsel %vm578_vm1, %v427_v14, 0.0  ;;  %v1149_v20 = vsel %vm578_vm1, %v860_v21, 0.0  ;;  %vm725_vm15 = vcmp.gt.f32.partialorder %v1641_v47, 0.5 }
  0x58   : > { %v639_v13 = vadd.f32 %v638_v61, %v637_v2  ;;  %v1138_v61 = vadd.f32 %v1137_v51, %v1136_v53  ;;  %v1351_v2 = vsel %vm717_vm7, 1.0, %v1419_v38  ;;  %v426_v7 = vrot.slane %v412_v55, %v1468_v12 }
  0x59   : > { %v861_v16 = vcombine.high %v1351_v2, %v1351_v2  ;;  %v868_v22 = vrot.slane %v1351_v2, %v1468_v12  ;;  %v444_v49 = vcombine.high %v436_v31, %v436_v31 }
  0x5a   : > { %v641_v23 = vadd.f32 %v640_v8, %v639_v13  ;;  %v1140_v3 = vadd.f32 %v1139_v57, %v1138_v61  ;;  %v189_v13 = vld [vmem:[%s1456_s18 + $0x60] sm:$0xff]  ;;  %v428_v30 = vcombine.high %v426_v7, %v426_v7  ;;  %v662_v37 = vsel %vm578_vm1, %v426_v7, 0.0 }
  0x5b   : > { %v205_v26 = vsub.f32 %v1622_v11, %v189_v13  ;;  %v875_v34 = vrot.slane %v861_v16, %v1468_v12  ;;  %v876_v36 = vcombine.high %v868_v22, %v868_v22  ;;  %v1151_v45 = vsel %vm578_vm1, %v868_v22, 0.0 }
  0x5c   : > { %v643_v28 = vadd.f32 %v642_v17, %v641_v23  ;;  %v1142_v17 = vadd.f32 %v1141_v63, %v1140_v3  ;;  %v1145_v23 = vsel %vm578_vm1, %v859_v0, 0.0  ;;  %v664_v50 = vsel %vm578_vm1, %v428_v30, 0.0 }
  0x5d   : > { %v222_v43 = vmul.f32 %v205_v26, %v205_v26  ;;  %v877_v54 = vcombine.high %v875_v34, %v875_v34  ;;  %v666_v57 = vsel %vm578_vm1, %v436_v31, 0.0  ;;  %v668_v63 = vsel %vm578_vm1, %v444_v49, 0.0 }
  0x5e   : > { %v645_v39 = vadd.f32 %v644_v18, %v643_v28  ;;  %v1144_v25 = vadd.f32 %v1143_v10, %v1142_v17  ;;  %v429_v18 = vcombine.high %v221_v6, %v221_v6  ;;  %v1147_v28 = vsel %vm578_vm1, %v858_v9, 0.0  ;;  %v1660_v17 = vld [vmem:[%s1451_s15 + $0x70] sm:$0xff] }
  0x5f   : > { %v453_v0 = vrot.slane %v222_v43, %v1468_v12  ;;  %v1157_v40 = vsel %vm578_vm1, %v877_v54, 0.0  ;;  %vm726_vm0 = vcmp.gt.f32.partialorder %v1660_v17, 0.5 }
  0x60   : > { %v647_v48 = vadd.f32 %v646_v32, %v645_v39  ;;  %v1146_v32 = vadd.f32 %v1145_v23, %v1144_v25  ;;  %v1352_v39 = vsel %vm718_vm8, 1.0, %v1419_v38  ;;  %v443_v4 = vrot.slane %v429_v18, %v1468_v12 }
  0x61   : > { %v878_v51 = vcombine.high %v1352_v39, %v1352_v39  ;;  %v885_v55 = vrot.slane %v1352_v39, %v1468_v12  ;;  %v461_v21 = vcombine.high %v453_v0, %v453_v0 }
  0x62   : > { %v649_v56 = vadd.f32 %v648_v44, %v647_v48  ;;  %v1148_v41 = vadd.f32 %v1147_v28, %v1146_v32  ;;  %v190_v48 = vld [vmem:[%s1456_s18 + $0x68] sm:$0xff]  ;;  %v445_v9 = vcombine.high %v443_v4, %v443_v4  ;;  %v670_v7 = vsel %vm578_vm1, %v443_v4, 0.0 }
  0x63   : > { %v206_v59 = vsub.f32 %v1641_v47, %v190_v48  ;;  %v892_v3 = vrot.slane %v878_v51, %v1468_v12  ;;  %v893_v6 = vcombine.high %v885_v55, %v885_v55  ;;  %v1159_v16 = vsel %vm578_vm1, %v885_v55, 0.0 }
  0x64   : > { %v651_v62 = vadd.f32 %v650_v52, %v649_v56  ;;  %v1150_v52 = vadd.f32 %v1149_v20, %v1148_v41  ;;  %v1153_v56 = vsel %vm578_vm1, %v876_v36, 0.0  ;;  %v672_v22 = vsel %vm578_vm1, %v445_v9, 0.0 }
  0x65   : > { %v223_v13 = vmul.f32 %v206_v59, %v206_v59  ;;  %v894_v26 = vcombine.high %v892_v3, %v892_v3  ;;  %v674_v28 = vsel %vm578_vm1, %v453_v0, 0.0  ;;  %v676_v20 = vsel %vm578_vm1, %v461_v21, 0.0 }
  0x66   : > { %v653_v8 = vadd.f32 %v652_v29, %v651_v62  ;;  %v1152_v58 = vadd.f32 %v1151_v45, %v1150_v52  ;;  %v446_v29 = vcombine.high %v222_v43, %v222_v43  ;;  %v1155_v62 = vsel %vm578_vm1, %v875_v34, 0.0  ;;  %v1679_v52 = vld [vmem:[%s1451_s15 + $0x78] sm:$0xff] }
  0x67   : > { %v470_v36 = vrot.slane %v223_v13, %v1468_v12  ;;  %v1165_v60 = vsel %vm578_vm1, %v894_v26, 0.0  ;;  %vm727_vm2 = vcmp.gt.f32.partialorder %v1679_v52, 0.5 }
  0x68   : > { %v655_v19 = vadd.f32 %v654_v1, %v653_v8  ;;  %v1154_v1 = vadd.f32 %v1153_v56, %v1152_v58  ;;  %v1353_v8 = vsel %vm719_vm9, 1.0, %v1419_v38  ;;  %v460_v14 = vrot.slane %v446_v29, %v1468_v12 }
  0x69   : > { %v895_v23 = vcombine.high %v1353_v8, %v1353_v8  ;;  %v902_v18 = vrot.slane %v1353_v8, %v1468_v12  ;;  %v478_v54 = vcombine.high %v470_v36, %v470_v36 }
  0x6a   : > { %v657_v27 = vadd.f32 %v656_v15, %v655_v19  ;;  %v1156_v10 = vadd.f32 %v1155_v62, %v1154_v1  ;;  %v191_v19 = vld [vmem:[%s1456_s18 + $0x70] sm:$0xff]  ;;  %v462_v34 = vcombine.high %v460_v14, %v460_v14  ;;  %v678_v4 = vsel %vm578_vm1, %v460_v14, 0.0 }
  0x6b   : > { %v207_v31 = vsub.f32 %v1660_v17, %v191_v19  ;;  %v909_v41 = vrot.slane %v895_v23, %v1468_v12  ;;  %v910_v43 = vcombine.high %v902_v18, %v902_v18  ;;  %v1167_v51 = vsel %vm578_vm1, %v902_v18, 0.0 }
  0x6c   : > { %v659_v33 = vadd.f32 %v658_v24, %v657_v27  ;;  %v1158_v24 = vadd.f32 %v1157_v40, %v1156_v10  ;;  %v1161_v27 = vsel %vm578_vm1, %v893_v6, 0.0  ;;  %v680_v55 = vsel %vm578_vm1, %v462_v34, 0.0 }
  0x6d   : > { %v224_v48 = vmul.f32 %v207_v31, %v207_v31  ;;  %v911_v59 = vcombine.high %v909_v41, %v909_v41  ;;  %v682_v62 = vsel %vm578_vm1, %v470_v36, 0.0  ;;  %v684_v40 = vsel %vm578_vm1, %v478_v54, 0.0 }
  0x6e   : > { %v661_v44 = vadd.f32 %v660_v46, %v659_v33  ;;  %v1160_v30 = vadd.f32 %v1159_v16, %v1158_v24  ;;  %v463_v46 = vcombine.high %v223_v13, %v223_v13  ;;  %v1163_v33 = vsel %vm578_vm1, %v892_v3, 0.0 }
  0x6f   : > { %v487_v6 = vrot.slane %v224_v48, %v1468_v12  ;;  %v1173_v14 = vsel %vm578_vm1, %v911_v59, 0.0 }
  0x70   : > { %v663_v53 = vadd.f32 %v662_v37, %v661_v44  ;;  %v1162_v37 = vadd.f32 %v1161_v27, %v1160_v30  ;;  %v1354_v44 = vsel %vm720_vm10, 1.0, %v1419_v38  ;;  %v477_v49 = vrot.slane %v463_v46, %v1468_v12 }
  0x71   : > { %v912_v56 = vcombine.high %v1354_v44, %v1354_v44  ;;  %v919_v29 = vrot.slane %v1354_v44, %v1468_v12  ;;  %v495_v24 = vcombine.high %v487_v6, %v487_v6  ;;  %v690_v46 = vsel %vm578_vm1, %v487_v6, 0.0 }
  0x72   : > { %v665_v61 = vadd.f32 %v664_v50, %v663_v53  ;;  %v1164_v45 = vadd.f32 %v1163_v33, %v1162_v37  ;;  %v192_v53 = vld [vmem:[%s1456_s18 + $0x78] sm:$0xff]  ;;  %v479_v3 = vcombine.high %v477_v49, %v477_v49  ;;  %v686_v35 = vsel %vm578_vm1, %v477_v49, 0.0 }
  0x73   : > { %v208_v0 = vsub.f32 %v1679_v52, %v192_v53  ;;  %v926_v10 = vrot.slane %v912_v56, %v1468_v12  ;;  %v927_v13 = vcombine.high %v919_v29, %v919_v29  ;;  %v1175_v23 = vsel %vm578_vm1, %v919_v29, 0.0 }
  0x74   : > { %v667_v2 = vadd.f32 %v666_v57, %v665_v61  ;;  %v1166_v57 = vadd.f32 %v1165_v60, %v1164_v45  ;;  %v1169_v61 = vsel %vm578_vm1, %v910_v43, 0.0 }
  0x75   : > { %v225_v19 = vmul.f32 %v208_v0, %v208_v0  ;;  %v1177_v31 = vsel %vm578_vm1, %v927_v13, 0.0  ;;  %v1179_v36 = vsel %vm578_vm1, %v926_v10, 0.0 }
  0x76   : > { %v669_v15 = vadd.f32 %v668_v63, %v667_v2  ;;  %v1168_v9 = vadd.f32 %v1167_v51, %v1166_v57  ;;  %v480_v63 = vcombine.high %v224_v48, %v224_v48  ;;  %v1171_v2 = vsel %vm578_vm1, %v909_v41, 0.0 }
  0x77   : > { %v497_v33 = vcombine.high %v225_v19, %v225_v19  ;;  %v504_v37 = vrot.slane %v225_v19, %v1468_v12  ;;  %v1356_v48 = vsel %vm722_vm12, 1.0, %v1419_v38 }
  0x78   : > { %v671_v25 = vadd.f32 %v670_v7, %v669_v15  ;;  %v1170_v7 = vadd.f32 %v1169_v61, %v1168_v9  ;;  %v1355_v15 = vsel %vm721_vm11, 1.0, %v1419_v38  ;;  %v494_v21 = vrot.slane %v480_v63, %v1468_v12 }
  0x79   : > { %v929_v26 = vcombine.high %v1355_v15, %v1355_v15  ;;  %v936_v30 = vrot.slane %v1355_v15, %v1468_v12  ;;  %v511_v5 = vrot.slane %v497_v33, %v1468_v12  ;;  %v512_v53 = vcombine.high %v504_v37, %v504_v37 }
  0x7a   : > { %v673_v32 = vadd.f32 %v672_v22, %v671_v25  ;;  %v1172_v16 = vadd.f32 %v1171_v2, %v1170_v7  ;;  %v688_v25 = vsel %vm578_vm1, %v479_v3, 0.0  ;;  %v694_v45 = vsel %vm578_vm1, %v494_v21, 0.0 }
  0x7b   : > { %v943_v60 = vrot.slane %v929_v26, %v1468_v12  ;;  %v1183_v51 = vsel %vm578_vm1, %v936_v30, 0.0  ;;  %v953_v59 = vrot.slane %v1356_v48, %v1468_v12  ;;  %v698_v61 = vsel %vm578_vm1, %v504_v37, 0.0 }
  0x7c   : > { %v675_v39 = vadd.f32 %v674_v28, %v673_v32  ;;  %v1174_v18 = vadd.f32 %v1173_v14, %v1172_v16  ;;  %v928_v28 = vcombine.high %v926_v10, %v926_v10  ;;  %v513_v63 = vcombine.high %v511_v5, %v511_v5 }
  0x7d   : > { %v1187_v0 = vsel %vm578_vm1, %v943_v60, 0.0  ;;  %v1357_v10 = vsel %vm723_vm13, 1.0, %v1419_v38  ;;  %v1191_v42 = vsel %vm578_vm1, %v953_v59, 0.0 }
  0x7e   : > { %v677_v50 = vadd.f32 %v676_v20, %v675_v39  ;;  %v1176_v32 = vadd.f32 %v1175_v23, %v1174_v18  ;;  %v496_v20 = vcombine.high %v494_v21, %v494_v21  ;;  %v692_v39 = vsel %vm578_vm1, %v495_v24, 0.0 }
  0x7f   : > { %v1181_v44 = vsel %vm578_vm1, %v928_v28, 0.0  ;;  %v963_v15 = vcombine.high %v1357_v10, %v1357_v10 }
  0x80   : > { %v679_v58 = vadd.f32 %v678_v4, %v677_v50  ;;  %v1178_v41 = vadd.f32 %v1177_v31, %v1176_v32  ;;  %v944_v4 = vcombine.high %v936_v30, %v936_v30  ;;  %v696_v54 = vsel %vm578_vm1, %v496_v20, 0.0 }
  0x81   : > { %v1358_v31 = vsel %vm724_vm14, 1.0, %v1419_v38 }
  0x82   : > { %v681_v1 = vadd.f32 %v680_v55, %v679_v58  ;;  %v1180_v49 = vadd.f32 %v1179_v36, %v1178_v41  ;;  %v946_v55 = vcombine.high %v1356_v48, %v1356_v48  ;;  %v945_v58 = vcombine.high %v943_v60, %v943_v60 }
  0x83   : > { %v1185_v29 = vsel %vm578_vm1, %v944_v4, 0.0  ;;  %v980_v36 = vcombine.high %v1358_v31, %v1358_v31  ;;  %v987_v20 = vrot.slane %v1358_v31, %v1468_v12 }
  0x84   : > { %v683_v8 = vadd.f32 %v682_v62, %v681_v1  ;;  %v1182_v56 = vadd.f32 %v1181_v44, %v1180_v49  ;;  %v700_v1 = vsel %vm578_vm1, %v512_v53, 0.0  ;;  %v960_v6 = vrot.slane %v946_v55, %v1468_v12 }
  0x85   : > { %v1189_v7 = vsel %vm578_vm1, %v945_v58, 0.0  ;;  %v995_v60 = vcombine.high %v987_v20, %v987_v20  ;;  %v1359_v44 = vsel %vm725_vm15, 1.0, %v1419_v38  ;;  %v1207_v48 = vsel %vm578_vm1, %v987_v20, 0.0  ;;  %v711_v20 = vld [vmem:[#allocation3] sm:$0x3] }
  0x86   : > { %v685_v22 = vadd.f32 %v684_v40, %v683_v8  ;;  %v1184_v62 = vadd.f32 %v1183_v51, %v1182_v56  ;;  %v961_v40 = vcombine.high %v953_v59, %v953_v59  ;;  %v702_v8 = vsel %vm578_vm1, %v511_v5, 0.0 }
  0x87   : > { %v962_v21 = vcombine.high %v960_v6, %v960_v6  ;;  %v1195_v26 = vsel %vm578_vm1, %v960_v6, 0.0  ;;  %v1004_v51 = vrot.slane %v1359_v44, %v1468_v12  ;;  %v1209_v47 = vsel %vm578_vm1, %v995_v60, 0.0 }
  0x88   : > { %v687_v27 = vadd.f32 %v686_v35, %v685_v22  ;;  %v1186_v2 = vadd.f32 %v1185_v29, %v1184_v62  ;;  %v704_v35 = vsel %vm578_vm1, %v513_v63, 0.0  ;;  %v970_v22 = vrot.slane %v1357_v10, %v1468_v12 }
  0x89   : > { %v1193_v23 = vsel %vm578_vm1, %v961_v40, 0.0  ;;  %v1197_v30 = vsel %vm578_vm1, %v962_v21, 0.0  ;;  %v1360_v59 = vsel %vm726_vm0, 1.0, %v1419_v38 }
  0x8a   : > { %v689_v34 = vadd.f32 %v688_v25, %v687_v27  ;;  %v1188_v13 = vadd.f32 %v1187_v0, %v1186_v2  ;;  %v977_v27 = vrot.slane %v963_v15, %v1468_v12  ;;  %v978_v28 = vcombine.high %v970_v22, %v970_v22 }
  0x8b   : > { %v1199_v32 = vsel %vm578_vm1, %v970_v22, 0.0  ;;  %v1014_v0 = vcombine.high %v1360_v59, %v1360_v59  ;;  %v1021_v63 = vrot.slane %v1360_v59, %v1468_v12 }
  0x8c   : > { %v691_v43 = vadd.f32 %v690_v46, %v689_v34  ;;  %v1190_v16 = vadd.f32 %v1189_v7, %v1188_v13  ;;  %v979_v34 = vcombine.high %v977_v27, %v977_v27  ;;  %v1201_v11 = vsel %vm578_vm1, %v978_v28, 0.0 }
  0x8d   : > { %v1028_v6 = vrot.slane %v1014_v0, %v1468_v12  ;;  %v1029_v40 = vcombine.high %v1021_v63, %v1021_v63  ;;  %v1223_v13 = vsel %vm578_vm1, %v1021_v63, 0.0 }
  0x8e   : > { %v693_v50 = vadd.f32 %v692_v39, %v691_v43  ;;  %v1192_v24 = vadd.f32 %v1191_v42, %v1190_v16  ;;  %v1203_v39 = vsel %vm578_vm1, %v977_v27, 0.0  ;;  %v994_v43 = vrot.slane %v980_v36, %v1468_v12 }
  0x8f   : > { %v1205_v4 = vsel %vm578_vm1, %v979_v34, 0.0  ;;  %v1030_v42 = vcombine.high %v1028_v6, %v1028_v6  ;;  %v1225_v52 = vsel %vm578_vm1, %v1029_v40, 0.0 }
  0x90   : > { %v695_v57 = vadd.f32 %v694_v45, %v693_v50  ;;  %v1194_v18 = vadd.f32 %v1193_v23, %v1192_v24  ;;  %v996_v5 = vcombine.high %v994_v43, %v994_v43  ;;  %v997_v50 = vcombine.high %v1359_v44, %v1359_v44 }
  0x91   : > { %v1229_v24 = vsel %vm578_vm1, %v1030_v42, 0.0 }
  0x92   : > { %v697_v9 = vadd.f32 %v696_v54, %v695_v57  ;;  %v1196_v46 = vadd.f32 %v1195_v26, %v1194_v18  ;;  %v1211_v54 = vsel %vm578_vm1, %v994_v43, 0.0  ;;  %v1011_v56 = vrot.slane %v997_v50, %v1468_v12 }
  0x93   : > { %v1012_v57 = vcombine.high %v1004_v51, %v1004_v51  ;;  %v1213_v58 = vsel %vm578_vm1, %v996_v5, 0.0 }
  0x94   : > { %v699_v3 = vadd.f32 %v698_v61, %v697_v9  ;;  %v1198_v33 = vadd.f32 %v1197_v30, %v1196_v46  ;;  %v1215_v61 = vsel %vm578_vm1, %v1004_v51, 0.0  ;;  %v1013_v9 = vcombine.high %v1011_v56, %v1011_v56 }
  0x95   : > { %v1217_v17 = vsel %vm578_vm1, %v1012_v57, 0.0  ;;  %v1219_v2 = vsel %vm578_vm1, %v1011_v56, 0.0 }
  0x96   : > { %v701_v14 = vadd.f32 %v700_v1, %v699_v3  ;;  %v1200_v37 = vadd.f32 %v1199_v32, %v1198_v33  ;;  %v1221_v7 = vsel %vm578_vm1, %v1013_v9, 0.0 }
  0x98   : > { %v703_v19 = vadd.f32 %v702_v8, %v701_v14  ;;  %v1202_v41 = vadd.f32 %v1201_v11, %v1200_v37  ;;  %v1361_v8 = vsel %vm727_vm2, 1.0, %v1419_v38 }
  0x99   : > { %v1038_v15 = vrot.slane %v1361_v8, %v1468_v12 }
  0x9a   : > { %v705_v25 = vadd.f32 %v704_v35, %v703_v19  ;;  %v1204_v45 = vadd.f32 %v1203_v39, %v1202_v41  ;;  %v1031_v35 = vcombine.high %v1361_v8, %v1361_v8  ;;  %v1227_v19 = vsel %vm578_vm1, %v1028_v6, 0.0 }
  0x9b   : > { %v1046_v23 = vcombine.high %v1038_v15, %v1038_v15 }
  0x9c   : > { %706 = vadd.xlane.f32.xlu0 %v705_v25  ;;  %v1206_v49 = vadd.f32 %v1205_v4, %v1204_v45  ;;  %v1045_v22 = vrot.slane %v1031_v35, %v1468_v12  ;;  %v1231_v25 = vsel %vm578_vm1, %v1038_v15, 0.0  ;;  %v209_v12 = vld [vmem:[#allocation2] sm:$0x3] }
  0x9d   : > { %v1233_v27 = vsel %vm578_vm1, %v1046_v23, 0.0 }
  0x9e   : > { %v1208_v53 = vadd.f32 %v1207_v48, %v1206_v49  ;;  %v1047_v18 = vcombine.high %v1045_v22, %v1045_v22  ;;  %v1235_v30 = vsel %vm578_vm1, %v1045_v22, 0.0 }
  0xa0   : > { %v1210_v55 = vadd.f32 %v1209_v47, %v1208_v53  ;;  %v1237_v46 = vsel %vm578_vm1, %v1047_v18, 0.0 }
  0xa2   : > { %v1212_v29 = vadd.f32 %v1211_v54, %v1210_v55 }
  0xa4   : > { %v1214_v62 = vadd.f32 %v1213_v58, %v1212_v29 }
  0xa6   : > { %v1216_v1 = vadd.f32 %v1215_v61, %v1214_v62 }
  0xa8   : > { %v1218_v3 = vadd.f32 %v1217_v17, %v1216_v1 }
  0xaa   : > { %v1220_v10 = vadd.f32 %v1219_v2, %v1218_v3 }
  0xac   : > { %v1222_v14 = vadd.f32 %v1221_v7, %v1220_v10 }
  0xae   : > { %v1224_v16 = vadd.f32 %v1223_v13, %v1222_v14 }
  0xb0   : > { %v1226_v21 = vadd.f32 %v1225_v52, %v1224_v16 }
  0xb2   : > { %v1228_v38 = vadd.f32 %v1227_v19, %v1226_v21 }
  0xb4   : > { %v1230_v26 = vadd.f32 %v1229_v24, %v1228_v38 }
  0xb6   : > { %v1232_v28 = vadd.f32 %v1231_v25, %v1230_v26 }
  0xb8   : > { %v1234_v31 = vadd.f32 %v1233_v27, %v1232_v28 }
  0xba   : > { %v1236_v32 = vadd.f32 %v1235_v30, %v1234_v31 }
  0xbc   : > { %v1238_v33 = vadd.f32 %v1237_v46, %v1236_v32 }
  0xbe   : > { %1239 = vadd.xlane.f32.xlu0 %v1238_v33 }
 0x125   : > { %v707_v34 = vpop.xlane.xlu0 %706 }
 0x126   : > { %v708_v36 = vadd.f32 %v707_v34, %v209_v12 }
 0x128   : > { %710 = vst.msk [vmem:[#allocation2] sm:$0x3] %vm709_vm3, %v708_v36 }
 0x146   : > { %1246 = sbr.rel (%p1362_p5) target bundleno = 617 (0x269), region = 36 }
 0x147   : > { %v1240_v11 = vpop.xlane.xlu0 %1239 }
 0x148   : > { %v1241_v37 = vadd.f32 %v1240_v11, %v711_v20 }
 0x14a   : > { %1242 = vst.msk [vmem:[#allocation3] sm:$0x3] %vm709_vm3, %v1241_v37 }
 0x14b   : > { %v1251_v41 = vld [vmem:[#allocation2] sm:$0x3]  ;;  %v1420_v43 = vmov 0.0  }
 0x151   : > { %v1247_v39 = vld [vmem:[#allocation3] sm:$0x3] }
 0x152   : > { %vm1248_vm1 = vcmp.gt.f32.partialorder %v1247_v39, 0.0 }
 0x153   : > { %v1363_v60 = vsel %vm1248_vm1, 1.0, %v1420_v43 }
 0x154   : > { %v1252_v4 = vmul.f32 %v1363_v60, %v1251_v41  ;;  %v1263_v45 = vsel %vm709_vm3, %v1363_v60, 0.0 }
 0x156   : > { %v1253_v44 = vsel %vm709_vm3, %v1252_v4, 0.0 }
 0x157   : > { %1254 = vadd.xlane.f32.xlu0 %v1253_v44 }
 0x15b   : > { %1264 = vadd.xlane.f32.xlu0 %v1263_v45 }
 0x1e0   : > { %v1255_v48 = vpop.xlane.xlu0 %1254 }
 0x1e1   : > { %v1256_v49 = vrot.slane %v1255_v48, 4 }
 0x1e3   : > { %v1257_v5 = vadd.f32 %v1256_v49, %v1255_v48 }
 0x1e4   : > { %v1265_v50 = vpop.xlane.xlu0 %1264 }
 0x1e5   : > { %v1258_v51 = vrot.slane %v1257_v5, 2  ;;  %v1266_v47 = vrot.slane %v1265_v50, 4 }
 0x1e7   : > { %v1267_v53 = vadd.f32 %v1266_v47, %v1265_v50  ;;  %v1259_v54 = vadd.f32 %v1258_v51, %v1257_v5 }
 0x1e9   : > { %v1268_v55 = vrot.slane %v1267_v53, 2  ;;  %v1260_v56 = vrot.slane %v1259_v54, 1 }
 0x1eb   : > { %v1269_v57 = vadd.f32 %v1268_v55, %v1267_v53  ;;  %v1261_v58 = vadd.f32 %v1260_v56, %v1259_v54 }
 0x1ed   : > { %1368 = vpush %v1261_v58  ;;  %v1270_v59 = vrot.slane %v1269_v57, 1 }
 0x1ef   : > { %v1271_v29 = vadd.f32 %v1270_v59, %v1269_v57 }
 0x1f1   : > { %1370 = vpush %v1271_v29 }
 0x21e   : > { %s1369_s19 = spop %1368 }
 0x222   : > { %s1371_s20 = spop %1370 }
 0x223   : > { %s1273_s21 = smul.f32 16384.0, %s1371_s20 }
 0x225   : > { %v1274_v61 = vstv %s1273_s21 }
 0x226   : > { %1393 = vrcp.f32 %v1274_v61 }
 0x233   : > { %v1394_v62 = vpop.eup %1393 }
 0x234   : > { %1372 = vpush %v1394_v62 }
 0x265   : > { %s1373_s22 = spop %1372 }
 0x266   : > { %s1277_s23 = smul.f32 %s1373_s22, %s1369_s19 }
 0x268   : > { %1279 = sst [smem:[#allocation4]] %s1277_s23 }
 0x269 PF: > { %p1378_p6 = scmp.eq.s32.totalorder %s1443_s10, 1  ;;  %s1421_s24 = smov [#allocation4]  }
 0x26b   : > { %1375 = dma.smem_to_hbm (%p1378_p6), %s1421_s24, 16, %s1779_s2, [#allocation5]  }
 0x26c   : > { %1410 = dma.done.wait (%p1378_p6), [#allocation5], 16  }
 0x26d   : > { %1412 = vsyncadd (%p1378_p6), [#allocation5], 4294967280 }
 0x26e   : > { %1293 = sfence }
 0x26f PF: > { %s13_s9 = sadd.s32 1, %s1415_s9  }
 0x270   : > { %p10_p7 = scmp.ge.s32.totalorder %s13_s9, 4  }
 0x272   :  { %12 = sbr.rel (!%p10_p7) target bundleno = 1 (0x1), region = 67 }
 0x277   :  { %1299 = vsyncpa [#allocation5], 1 }
 0x278   :  { %1301 = vsyncpa [#allocation5 + $0x1], 1 }

// kernel: model_forward.2
= control target key start
LH: loop header
LB: loop body
LE: loop exit
PB: predicated region body
PF: predicated region fallthrough
CT: control target
= control target key end

     0   :  { %s1290_s0 = inlined_call_operand.vmem [shape: f32[9], index: 0, kind: input, shape index: {}]   ;;  %s1291_s1 = inlined_call_operand.vmem [shape: f32[3], index: 1, kind: input, shape index: {}]   ;;  %s1292_s2 = inlined_call_operand.<no memory space> [shape: f32[1], index: 2, kind: input, shape index: {}]   ;;  %s1293_s3 = inlined_call_operand.vmem [shape: f32[24,1], index: 3, kind: input, shape index: {}]   ;;  %s1294_s4 = inlined_call_operand.vmem [shape: f32[24,1024], index: 4, kind: input, shape index: {}]   ;;  %s1295_s5 = inlined_call_operand.vmem [shape: f32[3,1024], index: 5, kind: input, shape index: {}]   ;;  %s1296_s6 = inlined_call_operand.hbm [shape: f32[3,1024], index: 6, kind: output, shape index: {}]  }
   0x1   :  { %11 = sst [smem:[#allocation2]] %s1292_s2 }
   0x2   :  { %12 = vsyncpa [#allocation5], 0 }
   0x3   :  { %13 = vsyncpa [#allocation7], 0 }
   0x4   :  { %14 = vsyncpa [#allocation4], 0 }
   0x5   :  { %16 = vsyncpa [#allocation4 + $0x1], 0  ;;  %s1077_s23 = smov 0   ;;  %s1079_s24 = smov 0  }
   0x6   :  { %s1081_s25 = smov 0   ;;  %s1083_s26 = smov 0  }
   0x7 LB: > { %s1098_s2 = sadd.s32 4294967295, %s1033_s26   ;;  %s822_s27 = sadd.s32 4294967294, %s1033_s26   ;;  %s1033_s26 = sphi %s1083_s26, %s1316_s26   ;;  %s1029_s25 = sphi %s1081_s25, %s1315_s25   ;;  %s1025_s24 = sphi %s1079_s24, %s1314_s24   ;;  %s1021_s23 = sphi %s1077_s23, %s1313_s23  }
   0x8   : > { %s1102_s28 = sadd.s32 1, %s1033_s26   ;;  %s113_s29 = sadd.s32 1, %s1029_s25 }
   0x9   : > { %s110_s30 = ssub.s32 %s1033_s26, %s1102_s28  ;;  %p120_p0 = scmp.ne.s32.totalorder %s1029_s25, %s1025_s24 }
   0xa   : > { %p111_p1 = scmp.eq.s32.totalorder %s110_s30, 0  ;;  %p121_p2 = scmp.eq.s32.totalorder %s1033_s26, 0 }
   0xb   : > { %p176_p3 = scmp.eq.s32.totalorder %s1098_s2, 1  ;;  %p181_p4 = scmp.ne.s32.totalorder %s1025_s24, %s1021_s23 }
   0xc   : > { %s1114_s7 = scalar_select %p111_p1, %s1029_s25, %s113_s29  }
   0xd   : > { %p1116_p5 = por %p121_p2, %p120_p0  ;;  %p1120_p6 = por %p176_p3, %p120_p0 }
   0xe   : > { %p182_p7 = scmp.eq.s32.totalorder %s822_s27, 1  ;;  %p823_p8 = scmp.ge.s32.totalorder %s1033_s26, 1 }
   0xf   : > { %s1300_s8 = scalar_select %p1116_p5, 1, 0 }
  0x10   : > { %s1301_s9 = scalar_select %p1120_p6, 1, 0 }
  0x11   : > { %p189_p9 = scmp.lt.s32.totalorder %s1033_s26, 3  ;;  %p1126_p10 = por %p182_p7, %p181_p4 }
  0x12   : > { %p1297_p11 = scmp.eq.s32.totalorder %s1098_s2, 0  ;;  %s202_s14 = sshll.u32 %s1290_s0, 4  ;;  %s203_s14 = int_to_ptr.vmem [resolvable:$true] %s202_s14 }
  0x13   : > { %s1302_s10 = scalar_select %p1126_p10, 1, 0 }
  0x14   : > { %p1131_p12 = pnand %p823_p8, %p189_p9  ;;  %s213_s17 = sshll.u32 %s1291_s1, 4  ;;  %s214_s17 = int_to_ptr.vmem [resolvable:$true] %s213_s17 }
  0x15   : > { %s935_s19 = scalar_lea.vmem %s203_s14, 16  ;;  %p943_p7 = scmp.lt.s32.totalorder %s203_s14, %s203_s14 }
  0x16   : > { %s1303_s11 = scalar_select %p1131_p12, 1, 0 }
  0x17   : > { %p878_p13 = pneg %p1131_p12  ;;  %p936_p1 = scmp.ne.s32.totalorder %s203_s14, %s935_s19 }
  0x18   : > { %p944_p8 = scmp.lt.s32.totalorder %s935_s19, %s935_s19 }
  0x19   : > { %p1145_p0 = pnand %p1297_p11, %p878_p13 }
  0x1a   : > { %p945_p9 = por %p944_p8, %p943_p7 }
  0x1b   : > { %p937_p2 = pneg %p1145_p0 }
  0x1d   : > { %p938_p3 = pnand %p937_p2, %p936_p1 }
  0x1f   : > { %p939_p4 = pneg %p938_p3 }
  0x21   : > { %p946_p10 = pnand %p945_p9, %p939_p4 }
  0x23   : > { %949 = shalt.err (!%p946_p10)
}
  0x24   : > { %s1035_s20 = smov [#allocation3]   ;;  %s950_s21 = scalar_lea.vmem %s214_s17, 16 }
  0x25   : > { %881 = dma.vmem_to_smem (!%p1145_p0), %s203_s14, 16, %s1035_s20, [#allocation5]  }
  0x26   : > { %p951_p13 = scmp.ne.s32.totalorder %s214_s17, %s950_s21  ;;  %p958_p12 = scmp.lt.s32.totalorder %s214_s17, %s214_s17 }
  0x27   : > { %p959_p5 = scmp.lt.s32.totalorder %s950_s21, %s950_s21 }
  0x28   : > { %p953_p11 = pnand %p951_p13, %p937_p2 }
  0x29   : > { %p960_p1 = por %p959_p5, %p958_p12 }
  0x2a   : > { %p954_p6 = pneg %p953_p11 }
  0x2c   : > { %p961_p3 = pnand %p960_p1, %p954_p6 }
  0x2e   : > { %964 = shalt.err (!%p961_p3)
}
  0x2f   : > { %s1036_s22 = smov [#allocation6]   ;;  %p826_p10 = scmp.ge.s32.totalorder %s1033_s26, 2 }
  0x30   : > { %884 = dma.vmem_to_smem (!%p1145_p0), %s214_s17, 16, %s1036_s22, [#allocation7]  }
  0x31   : > { %226 = sbr.rel (%p826_p10) target bundleno = 65 (0x41), region = 32  ;;  %p1305_p4 = scmp.ne.s32.totalorder (!%p826_p10), %s1300_s8, 0 }
  0x36   : > { %229 = sbr.rel (!%p1305_p4) target bundleno = 65 (0x41), region = 36  ;;  %s231_s27 = sand.u32 (%p1305_p4), 1, %s1029_s25  }
  0x37   : > { %s864_s29 = sshll.u32 (%p1305_p4), %s1033_s26, 5  ;;  %s866_s30 = smul.u32 (%p1305_p4), 96, %s231_s27 }
  0x38   : > { %s236_s14 = scalar_lea.vmem (%p1305_p4), %s1294_s4, %s864_s29 }
  0x39   : > { %v249_v0 = vld [vmem:[%s236_s14] sm:$0xff] (%p1305_p4)  ;;  %v251_v1 = vld [vmem:[%s236_s14 + $0x8] sm:$0xff] (%p1305_p4)  ;;  %v253_v2 = vld [vmem:[%s236_s14 + $0x10] sm:$0xff] (%p1305_p4)  ;;  %s233_s15 = scalar_lea.vmem (%p1305_p4), [#allocation8], %s866_s30 }
  0x3a   : > { %v255_v3 = vld [vmem:[%s236_s14 + $0x18] sm:$0xff] (%p1305_p4)  ;;  %v257_v4 = vld [vmem:[%s236_s14 + $0x40] sm:$0xff] (%p1305_p4)  ;;  %v259_v5 = vld [vmem:[%s236_s14 + $0x48] sm:$0xff] (%p1305_p4)  ;;  %250 = vst [vmem:[%s233_s15] sm:$0xff] (%p1305_p4), %v249_v0 }
  0x3b   : > { %252 = vst [vmem:[%s233_s15 + $0x8] sm:$0xff] %v251_v1  ;;  %254 = vst [vmem:[%s233_s15 + $0x10] sm:$0xff] %v253_v2  ;;  %v261_v6 = vld [vmem:[%s236_s14 + $0x50] sm:$0xff]  ;;  %v263_v7 = vld [vmem:[%s236_s14 + $0x58] sm:$0xff] }
  0x3c   : > { %256 = vst [vmem:[%s233_s15 + $0x18] sm:$0xff] %v255_v3  ;;  %258 = vst [vmem:[%s233_s15 + $0x20] sm:$0xff] %v257_v4  ;;  %v265_v8 = vld [vmem:[%s236_s14 + $0x80] sm:$0xff]  ;;  %v267_v9 = vld [vmem:[%s236_s14 + $0x88] sm:$0xff] }
  0x3d   : > { %260 = vst [vmem:[%s233_s15 + $0x28] sm:$0xff] %v259_v5  ;;  %262 = vst [vmem:[%s233_s15 + $0x30] sm:$0xff] %v261_v6  ;;  %v269_v10 = vld [vmem:[%s236_s14 + $0x90] sm:$0xff]  ;;  %v271_v11 = vld [vmem:[%s236_s14 + $0x98] sm:$0xff] }
  0x3e   : > { %264 = vst [vmem:[%s233_s15 + $0x38] sm:$0xff] %v263_v7  ;;  %266 = vst [vmem:[%s233_s15 + $0x40] sm:$0xff] %v265_v8 }
  0x3f   : > { %268 = vst [vmem:[%s233_s15 + $0x48] sm:$0xff] %v267_v9  ;;  %270 = vst [vmem:[%s233_s15 + $0x50] sm:$0xff] %v269_v10 }
  0x40   : > { %272 = vst [vmem:[%s233_s15 + $0x58] sm:$0xff] %v271_v11 }
  0x41 PF: > { %p1306_p5 = scmp.ne.s32.totalorder %s1303_s11, 0 }
  0x42   : > { %p1307_p6 = scmp.eq.s32.totalorder (!%p1306_p5), %s1098_s2, 0 }
  0x43   : > { %290 = sbr.rel (%p1306_p5) target bundleno = 284 (0x11c), region = 63 }
  0x48   : > { %1008 = dma.done.wait (%p1307_p6), [#allocation5], 16   ;;  %p1308_p11 = pmov %p1307_p6 }
  0x49   : > { %p1309_p12 = pmov %p1307_p6 }
  0x4a   : > { %1010 = vsyncadd (%p1308_p11), [#allocation5], 4294967280 }
  0x4b   : > { %1012 = dma.done.wait (%p1309_p12), [#allocation7], 16   ;;  %p1310_p0 = pmov %p1307_p6 }
  0x4c   : > { %s1176_s8 = sand.u32 1, %s1025_s24  }
  0x4d   : > { %1014 = vsyncadd (%p1310_p0), [#allocation7], 4294967280  ;;  %s867_s16 = smul.u32 96, %s1176_s8 }
  0x4f   : > { %s1179_s17 = scalar_lea.vmem [#allocation8], %s867_s16 }
  0x50   : > { %307 = sfence }
  0x51   : > { %v357_v12 = vld [vmem:[%s1293_s3 + $0x8] sm:$0xff]  ;;  %v356_v13 = vld [vmem:[%s1293_s3] sm:$0xff]  ;;  %v1037_v14 = vmov 0   ;;  %v358_v15 = vld [vmem:[%s1293_s3 + $0x10] sm:$0xff]  ;;  %s833_s27 = sshll.u32 %s1098_s2, 2  ;;  %s1203_s29 = sld [smem:[#allocation3 + $0x7]] }
  0x52   : > { %930 = vset.pattern.permute.xlu1 %v1037_v14  ;;  %929 = vset.pattern.permute.xlu0 %v1037_v14  ;;  %v348_v16 = vld [vmem:[%s1179_s17 + $0x20] sm:$0xff]  ;;  %v349_v17 = vld [vmem:[%s1179_s17 + $0x28] sm:$0xff]  ;;  %v350_v18 = vld [vmem:[%s1179_s17 + $0x30] sm:$0xff]  ;;  %p338_p2 = scmp.lt.s32.totalorder %s833_s27, 7  ;;  %s1210_s15 = sld [smem:[#allocation3 + $0x6]]  ;;  %vm688_vm0 = vcmask 1040384  }
  0x53   : > { %366 = vperm.xlu0 %929, %v357_v12   ;;  %361 = vperm.xlu1 %930, %v356_v13   ;;  %v351_v19 = vld [vmem:[%s1179_s17 + $0x38] sm:$0xff]  ;;  %v344_v20 = vld [vmem:[%s1179_s17] sm:$0xff]  ;;  %v345_v21 = vld [vmem:[%s1179_s17 + $0x8] sm:$0xff]  ;;  %s1213_s16 = sld [smem:[#allocation3 + $0x8]]  ;;  %vm693_vm1 = vcmask 1041408   ;;  %s832_s12 = sshll.u32 %s1176_s8, 4 }
  0x54   : > { %v346_v34 = vld [vmem:[%s1179_s17 + $0x10] sm:$0xff]  ;;  %v347_v35 = vld [vmem:[%s1179_s17 + $0x18] sm:$0xff]  ;;  %v352_v57 = vld [vmem:[%s1179_s17 + $0x40] sm:$0xff]  ;;  %s1318_s27 = smov (!%p338_p2, %s833_s27), 7  ;;  %s1217_s11 = sld [smem:[#allocation3 + $0x4]] }
  0x55   : > { %v353_v58 = vld [vmem:[%s1179_s17 + $0x48] sm:$0xff]  ;;  %v354_v5 = vld [vmem:[%s1179_s17 + $0x50] sm:$0xff]  ;;  %v355_v6 = vld [vmem:[%s1179_s17 + $0x58] sm:$0xff]  ;;  %s834_s30 = sshll.u32 %s1318_s27, 2  ;;  %s1215_s17 = sld [smem:[#allocation3 + $0x1]] }
  0x56   : > { %s1208_s14 = scalar_lea.vmem %s1295_s5, %s834_s30  ;;  %s1220_s18 = sld [smem:[#allocation3 + $0x2]] }
  0x57   : > { %371 = vperm.xlu0 %929, %v358_v15   ;;  %s1222_s19 = sld [smem:[#allocation3 + $0x5]]  ;;  %s865_s13 = sshll.u32 %s1098_s2, 8 }
  0x58   : > { %s1224_s20 = sld [smem:[#allocation3]]  ;;  %p1311_p8 = scmp.ne.s32.totalorder %s1301_s9, 0 }
  0x59   : > { %s1227_s21 = sld [smem:[#allocation6 + $0x2]] }
  0x5a   : > { %s1230_s22 = sld [smem:[#allocation3 + $0x3]] }
  0x5b   : > { %s1238_s27 = sld [smem:[#allocation6]] }
  0x5c   : > { %s602_s30 = sld [smem:[#allocation2]] }
  0xce   : > { %v367_v22 = vpop.permute.xlu0 %366  ;;  %v362_v23 = vpop.permute.xlu1 %361 }
  0xcf   : > { %v378_v24 = vmul.f32 %v367_v22, %v348_v16  ;;  %v379_v25 = vmul.f32 %v367_v22, %v349_v17  ;;  %v380_v26 = vmul.f32 %v367_v22, %v350_v18  ;;  %v381_v27 = vmul.f32 %v367_v22, %v351_v19 }
  0xd0   : > { %v374_v28 = vmul.f32 %v362_v23, %v344_v20  ;;  %v375_v29 = vmul.f32 %v362_v23, %v345_v21  ;;  %v376_v44 = vmul.f32 %v362_v23, %v346_v34  ;;  %v377_v45 = vmul.f32 %v362_v23, %v347_v35 }
  0xd1   : > { %v422_v30 = vrot.slane %v378_v24, 4  ;;  %v428_v31 = vrot.slane %v379_v25, 4  ;;  %v434_v32 = vrot.slane %v380_v26, 4  ;;  %v440_v33 = vrot.slane %v381_v27, 4 }
  0xd2   : > { %v388_v40 = vrot.slane %v374_v28, 4  ;;  %v394_v41 = vrot.slane %v375_v29, 4  ;;  %v400_v52 = vrot.slane %v376_v44, 4  ;;  %v406_v53 = vrot.slane %v377_v45, 4  ;;  %v372_v56 = vpop.permute.xlu0 %371 }
  0xd3   : > { %v423_v36 = vadd.f32 %v422_v30, %v378_v24  ;;  %v429_v37 = vadd.f32 %v428_v31, %v379_v25  ;;  %v435_v38 = vadd.f32 %v434_v32, %v380_v26  ;;  %v441_v39 = vadd.f32 %v440_v33, %v381_v27 }
  0xd4   : > { %v389_v50 = vadd.f32 %v388_v40, %v374_v28  ;;  %v395_v51 = vadd.f32 %v394_v41, %v375_v29  ;;  %v401_v63 = vadd.f32 %v400_v52, %v376_v44  ;;  %v407_v0 = vadd.f32 %v406_v53, %v377_v45 }
  0xd5   : > { %v424_v42 = vrot.slane %v423_v36, 2  ;;  %v430_v43 = vrot.slane %v429_v37, 2  ;;  %v436_v48 = vrot.slane %v435_v38, 2  ;;  %v442_v49 = vrot.slane %v441_v39, 2 }
  0xd6   : > { %v390_v61 = vrot.slane %v389_v50, 2  ;;  %v396_v62 = vrot.slane %v395_v51, 2  ;;  %v382_v1 = vmul.f32 %v372_v56, %v352_v57  ;;  %v383_v2 = vmul.f32 %v372_v56, %v353_v58 }
  0xd7   : > { %v425_v46 = vadd.f32 %v424_v42, %v423_v36  ;;  %v431_v47 = vadd.f32 %v430_v43, %v429_v37  ;;  %v437_v59 = vadd.f32 %v436_v48, %v435_v38  ;;  %v443_v60 = vadd.f32 %v442_v49, %v441_v39  ;;  %v386_v36 = vld [vmem:[%s1208_s14] sm:$0x77] }
  0xd8   : > { %v458_v9 = vrot.slane %v382_v1, 4  ;;  %v464_v10 = vrot.slane %v383_v2, 4  ;;  %v391_v11 = vadd.f32 %v390_v61, %v389_v50  ;;  %v397_v12 = vadd.f32 %v396_v62, %v395_v51 }
  0xd9   : > { %v426_v54 = vrot.slane %v425_v46, 1  ;;  %v432_v55 = vrot.slane %v431_v47, 1  ;;  %v438_v7 = vrot.slane %v437_v59, 1  ;;  %v444_v8 = vrot.slane %v443_v60, 1 }
  0xda   : > { %v402_v13 = vrot.slane %v401_v63, 2  ;;  %v408_v14 = vrot.slane %v407_v0, 2  ;;  %v384_v15 = vmul.f32 %v372_v56, %v354_v5  ;;  %v385_v16 = vmul.f32 %v372_v56, %v355_v6 }
  0xdb   : > { %v427_v3 = vadd.f32 %v426_v54, %v425_v46  ;;  %v433_v4 = vadd.f32 %v432_v55, %v431_v47  ;;  %v459_v18 = vadd.f32 %v458_v9, %v382_v1  ;;  %v465_v19 = vadd.f32 %v464_v10, %v383_v2  ;;  %v387_v55 = vld [vmem:[%s1208_s14 + $0x8] sm:$0x77]  ;;  %s335_s14 = scalar_lea.vmem [#allocation9], %s832_s12 }
  0xdc   : > { %v439_v20 = vadd.f32 %v438_v7, %v437_v59  ;;  %v445_v21 = vadd.f32 %v444_v8, %v443_v60  ;;  %v392_v22 = vrot.slane %v391_v11, 1  ;;  %v398_v23 = vrot.slane %v397_v12, 1 }
  0xdd   : > { %v450_v17 = vcombine.low %v427_v3, %v433_v4  ;;  %v403_v24 = vadd.f32 %v402_v13, %v401_v63  ;;  %v409_v25 = vadd.f32 %v408_v14, %v407_v0  ;;  %v470_v26 = vrot.slane %v384_v15, 4 }
  0xde   : > { %v476_v27 = vrot.slane %v385_v16, 4  ;;  %v460_v29 = vrot.slane %v459_v18, 2  ;;  %v466_v30 = vrot.slane %v465_v19, 2  ;;  %v451_v31 = vcombine.low %v439_v20, %v445_v21 }
  0xdf   : > { %v452_v28 = vrot.slane %v450_v17, 7  ;;  %v393_v32 = vadd.f32 %v392_v22, %v391_v11  ;;  %v399_v33 = vadd.f32 %v398_v23, %v397_v12  ;;  %v404_v37 = vrot.slane %v403_v24, 1 }
  0xe0   : > { %v461_v34 = vadd.f32 %v460_v29, %v459_v18  ;;  %v467_v35 = vadd.f32 %v466_v30, %v465_v19  ;;  %v410_v38 = vrot.slane %v409_v25, 1  ;;  %v471_v39 = vadd.f32 %v470_v26, %v384_v15 }
  0xe1   : > { %v477_v40 = vadd.f32 %v476_v27, %v385_v16  ;;  %v456_v41 = vadd.f32 %v452_v28, %v386_v36  ;;  %v453_v44 = vrot.slane %v451_v31, 7  ;;  %v571_v45 = vstv %s1203_s29  ;;  %s1241_s29 = sld [smem:[#allocation6 + $0x1]] }
  0xe2   : > { %v462_v42 = vrot.slane %v461_v34, 1  ;;  %v468_v43 = vrot.slane %v467_v35, 1  ;;  %v472_v46 = vrot.slane %v471_v39, 2  ;;  %v416_v48 = vcombine.low %v393_v32, %v399_v33 }
  0xe3   : > { %v478_v47 = vrot.slane %v477_v40, 2  ;;  %v405_v51 = vadd.f32 %v404_v37, %v403_v24  ;;  %v411_v52 = vadd.f32 %v410_v38, %v409_v25  ;;  %v572_v56 = vmul.f32 %v571_v45, %v456_v41 }
  0xe4   : > { %v463_v49 = vadd.f32 %v462_v42, %v461_v34  ;;  %v469_v50 = vadd.f32 %v468_v43, %v467_v35  ;;  %v473_v53 = vadd.f32 %v472_v46, %v471_v39  ;;  %v457_v58 = vadd.f32 %v453_v44, %v387_v55 }
  0xe5   : > { %v479_v54 = vadd.f32 %v478_v47, %v477_v40  ;;  %v567_v61 = vstv %s1210_s15  ;;  %v420_v62 = vadd.f32 %v416_v48, %v386_v36  ;;  %v417_v0 = vcombine.low %v405_v51, %v411_v52  ;;  %s723_s15 = sshll.u32 %s335_s14, 4  ;;  %s724_s15 = int_to_ptr.vmem [resolvable:$true] %s723_s15 }
  0xe6   : > { %v486_v57 = vcombine.low %v463_v49, %v469_v50  ;;  %v474_v59 = vrot.slane %v473_v53, 1  ;;  %v585_v1 = vstv %s1213_s16  ;;  %v851_v4 = vrot.slane %v572_v56, 9  ;;  %s965_s2 = scalar_lea.vmem %s724_s15, 256 }
  0xe7   : > { %v480_v60 = vrot.slane %v479_v54, 1  ;;  %v499_v6 = vstv %s1215_s17  ;;  %v535_v7 = vstv %s1217_s11  ;;  %v573_v8 = vmul.f32 %v571_v45, %v457_v58  ;;  %s721_s11 = scalar_lea.hbm %s1296_s6, %s865_s13  ;;  %p966_p7 = scmp.ne.s32.totalorder %s724_s15, %s965_s2 }
  0xe8   : > { %v488_v63 = vrot.slane %v486_v57, 6  ;;  %v475_v2 = vadd.f32 %v474_v59, %v473_v53  ;;  %v568_v10 = vmul.f32 %v567_v61, %v420_v62  ;;  %v421_v12 = vadd.f32 %v417_v0, %v387_v55 }
  0xe9   : > { %v481_v3 = vadd.f32 %v480_v60, %v479_v54  ;;  %v513_v13 = vstv %s1220_s18  ;;  %v549_v14 = vstv %s1222_s19  ;;  %v500_v16 = vmul.f32 %v499_v6, %v456_v41  ;;  %s709_s18 = scalar_lea.sflag [#allocation4], %s1176_s8  ;;  %p967_p9 = pnand %p966_p7, %p1311_p8 }
  0xea   : > { %v492_v5 = vadd.f32 %v488_v63, %v386_v36  ;;  %v536_v17 = vmul.f32 %v535_v7, %v456_v41  ;;  %v582_v18 = vadd.f32 %v851_v4, %v568_v10  ;;  %v495_v20 = vstv %s1224_s20  ;;  %s1038_s19 = smov [#allocation9]  }
  0xeb   : > { %v487_v9 = vcombine.low %v475_v2, %v481_v3  ;;  %v852_v21 = vrot.slane %v573_v8, 9  ;;  %v599_v23 = vstv %s1227_s21  ;;  %v531_v27 = vstv %s1230_s22  ;;  %p968_p13 = pneg %p967_p9  ;;  %s969_s20 = sshll.u32 %s1038_s19, 4  ;;  %s970_s20 = int_to_ptr.vmem [resolvable:$false] %s969_s20 }
  0xec   : > { %v586_v11 = vmul.f32 %v585_v1, %v492_v5  ;;  %v514_v24 = vmul.f32 %v513_v13, %v492_v5  ;;  %v550_v25 = vmul.f32 %v549_v14, %v492_v5  ;;  %v501_v28 = vmul.f32 %v499_v6, %v457_v58  ;;  %s971_s21 = scalar_lea.vmem %s970_s20, 512  ;;  %p972_p1 = scmp.lt.s32.totalorder %s724_s15, %s970_s20 }
  0xed   : > { %v489_v15 = vrot.slane %v487_v9, 6  ;;  %v569_v29 = vmul.f32 %v567_v61, %v421_v12  ;;  %v496_v31 = vmul.f32 %v495_v20, %v420_v62  ;;  %v836_v32 = vrot.slane %v500_v16, 9  ;;  %p973_p3 = scmp.lt.s32.totalorder %s971_s21, %s965_s2 }
  0xee   : > { %v854_v19 = vrot.slane %v586_v11, 10  ;;  %v843_v33 = vrot.slane %v536_v17, 9  ;;  %v537_v35 = vmul.f32 %v535_v7, %v457_v58  ;;  %v532_v39 = vmul.f32 %v531_v27, %v420_v62 }
  0xef   : > { %v493_v22 = vadd.f32 %v489_v15, %v387_v55  ;;  %v583_v36 = vadd.f32 %v852_v21, %v569_v29  ;;  %v839_v40 = vrot.slane %v514_v24, 10  ;;  %v846_v41 = vrot.slane %v550_v25, 10  ;;  %p974_p4 = por %p973_p3, %p972_p1 }
  0xf0   : > { %v596_v26 = vadd.f32 %v854_v19, %v582_v18  ;;  %v837_v42 = vrot.slane %v501_v28, 9  ;;  %v510_v45 = vadd.f32 %v836_v32, %v496_v31  ;;  %v546_v46 = vadd.f32 %v843_v33, %v532_v39 }
  0xf1   : > { %v587_v30 = vmul.f32 %v585_v1, %v493_v22  ;;  %v515_v37 = vmul.f32 %v513_v13, %v493_v22  ;;  %v551_v43 = vmul.f32 %v549_v14, %v493_v22  ;;  %v624_v47 = vlaneseq  ;;  %p975_p5 = pnand %p974_p4, %p968_p13 }
  0xf2   : > { %v600_v34 = vadd.f32 %v599_v23, %v596_v26  ;;  %v497_v48 = vmul.f32 %v495_v20, %v421_v12  ;;  %v844_v49 = vrot.slane %v537_v35, 9  ;;  %v524_v52 = vadd.f32 %v839_v40, %v510_v45 }
  0xf3   : > { %v855_v38 = vrot.slane %v587_v30, 10  ;;  %v840_v50 = vrot.slane %v515_v37, 10  ;;  %v560_v53 = vadd.f32 %v846_v41, %v546_v46  ;;  %v527_v54 = vstv %s1238_s27 }
  0xf4   : > { %931 = vrcp.f32 %v600_v34  ;;  %v563_v55 = vstv %s1241_s29  ;;  %v511_v56 = vadd.f32 %v837_v42, %v497_v48  ;;  %v533_v57 = vmul.f32 %v531_v27, %v421_v12 }
  0xf5   : > { %v597_v44 = vadd.f32 %v855_v38, %v583_v36  ;;  %v847_v58 = vrot.slane %v551_v43, 10  ;;  %v625_v61 = vshrl.u32 %v624_v47, 7  ;;  %v528_v62 = vadd.f32 %v527_v54, %v524_v52 }
  0xf6   : > { %v547_v59 = vadd.f32 %v844_v49, %v533_v57  ;;  %v525_v60 = vadd.f32 %v840_v50, %v511_v56  ;;  %v564_v63 = vadd.f32 %v563_v55, %v560_v53  ;;  %v857_v0 = vadd.f32 -1.0, %v600_v34 }
  0xf7   : > { %v601_v51 = vadd.f32 %v599_v23, %v597_v44  ;;  %v607_v2 = vstv %s602_s30  ;;  %v626_v4 = vsub.s32 0, %v625_v61  ;;  %v630_v8 = vsub.s32 4, %v625_v61 }
  0xf8   : > { %v561_v1 = vadd.f32 %v847_v58, %v547_v59  ;;  %v529_v3 = vadd.f32 %v527_v54, %v525_v60  ;;  %v608_v5 = vmul.f32 %v607_v2, %v528_v62  ;;  %v612_v6 = vmul.f32 %v607_v2, %v564_v63 }
  0xf9   : > { %933 = vrcp.f32 %v601_v51  ;;  %v618_v7 = vmul.f32 100.0, %v857_v0  ;;  %v858_v11 = vadd.f32 -1.0, %v601_v51 }
  0xfa   : > { %v565_v10 = vadd.f32 %v563_v55, %v561_v1  ;;  %v609_v15 = vmul.f32 %v607_v2, %v529_v3 }
  0xfb   : > { %v619_v21 = vmul.f32 100.0, %v858_v11 }
  0xfc   : > { %v613_v20 = vmul.f32 %v607_v2, %v565_v10 }
 0x101   : > { %v932_v9 = vpop.eup %931 }
 0x102   : > { %v610_v12 = vmul.f32 %v932_v9, %v608_v5  ;;  %v614_v13 = vmul.f32 %v932_v9, %v612_v6  ;;  %v620_v14 = vmul.f32 %v932_v9, %v618_v7 }
 0x104   : > { %v627_v16 = vrot.slane %v610_v12, %v626_v4  ;;  %v631_v17 = vrot.slane %v610_v12, %v630_v8  ;;  %v649_v18 = vrot.slane %v614_v13, %v626_v4  ;;  %v653_v19 = vrot.slane %v614_v13, %v630_v8 }
 0x105   : > { %v671_v22 = vrot.slane %v620_v14, %v626_v4  ;;  %v675_v23 = vrot.slane %v620_v14, %v630_v8 }
 0x106   : > { %v934_v24 = vpop.eup %933  ;;  %v689_v25 = vsel %vm688_vm0, %v627_v16, %v649_v18  ;;  %v690_v26 = vsel %vm688_vm0, %v631_v17, %v653_v19 }
 0x107   : > { %v611_v27 = vmul.f32 %v934_v24, %v609_v15  ;;  %v615_v28 = vmul.f32 %v934_v24, %v613_v20  ;;  %v621_v29 = vmul.f32 %v934_v24, %v619_v21  ;;  %v694_v30 = vsel %vm693_vm1, %v689_v25, %v671_v22 }
 0x108   : > { %v695_v31 = vsel %vm693_vm1, %v690_v26, %v675_v23 }
 0x109   : > { %v635_v32 = vrot.slane %v611_v27, %v626_v4  ;;  %v639_v33 = vrot.slane %v611_v27, %v630_v8  ;;  %v657_v34 = vrot.slane %v615_v28, %v626_v4  ;;  %v661_v35 = vrot.slane %v615_v28, %v630_v8 }
 0x10a   : > { %v679_v36 = vrot.slane %v621_v29, %v626_v4  ;;  %v683_v37 = vrot.slane %v621_v29, %v630_v8  ;;  %v702_v38 = vcombine.low %v694_v30, %v695_v31 }
 0x10b   : > { %v691_v39 = vsel %vm688_vm0, %v635_v32, %v657_v34  ;;  %v692_v40 = vsel %vm688_vm0, %v639_v33, %v661_v35 }
 0x10c   : > { %v696_v41 = vsel %vm693_vm1, %v691_v39, %v679_v36  ;;  %v697_v42 = vsel %vm693_vm1, %v692_v40, %v683_v37  ;;  %706 = vst [vmem:[%s335_s14] sm:$0x77] %v702_v38 }
 0x10d   : > { %v703_v43 = vcombine.low %v696_v41, %v697_v42 }
 0x10f   : > { %707 = vst [vmem:[%s335_s14 + $0x8] sm:$0x77] %v703_v43 }
 0x110   : > { %978 = shalt.err (!%p975_p5)
}
 0x111   : > { %s979_s22 = scalar_lea.hbm %s721_s11, 256  ;;  %s983_s29 = scalar_lea.hbm %s1296_s6, 512 }
 0x112   : > { %p980_p6 = scmp.ne.s32.totalorder %s721_s11, %s979_s22  ;;  %p984_p0 = scmp.lt.s32.totalorder %s721_s11, %s1296_s6 }
 0x113   : > { %p985_p2 = scmp.lt.s32.totalorder %s983_s29, %s979_s22 }
 0x114   : > { %p981_p11 = pnand %p980_p6, %p1311_p8 }
 0x115   : > { %p986_p7 = por %p985_p2, %p984_p0 }
 0x116   : > { %p982_p12 = pneg %p981_p11 }
 0x118   : > { %p987_p9 = pnand %p986_p7, %p982_p12 }
 0x11a   : > { %990 = shalt.err (!%p987_p9)
}
 0x11b   : > { %876 = dma.vmem_to_hbm [thread:$0]  (%p1311_p8), %s724_s15, 256, %s721_s11, %s709_s18  }
 0x11c PF: > { %s735_s13 = sand.u32 1, %s1021_s23   ;;  %p1312_p13 = scmp.ne.s32.totalorder %s1302_s10, 0 }
 0x11d   : > { %s736_s14 = scalar_lea.sflag [#allocation4], %s735_s13 }
 0x11e   : > { %p886_p1 = pnand %p826_p10, %p1312_p13 }
 0x120   : > { %p887_p3 = pneg %p886_p1 }
 0x122   : > { %1016 = dma.done.wait (%p887_p3), %s736_s14, 256  }
 0x123   : > { %1018 = vsyncadd (%p887_p3), %s736_s14, 4294967040  ;;  %p19_p4 = scmp.ge.s32.totalorder %s1102_s28, 4   ;;  %s1313_s23 = smov %s1025_s24 }
 0x124   : > { %s1314_s24 = smov %s1029_s25  ;;  %s1315_s25 = smov %s1114_s7 }
 0x125   : > { %s1316_s26 = smov %s1102_s28  ;;  %21 = sbr.rel (!%p19_p4) target bundleno = 7 (0x7), region = 119 }
 0x12a   :  { %741 = vsyncpa [#allocation4], 1 }
 0x12b   :  { %743 = vsyncpa [#allocation4 + $0x1], 1 }
 0x12c   :  { %744 = vsyncpa [#allocation5], 1 }
 0x12d   :  { %746 = vsyncpa [#allocation5 + $0x1], 1 }
 0x12e   :  { %747 = vsyncpa [#allocation7], 1 }

</bundles_post_ra>
